<compile_context>
chip_gen: v7x
topology: tpu7x:2x2x1
jax: 0.10.0
libtpu: 0.0.40
codegen_flags: <defaults>
</compile_context>

<pallas_src>
import numpy as np
import jax
import jax.numpy as jnp
from jax import lax
from jax.experimental import pallas as pl
from jax.experimental.pallas import tpu as pltpu

LATENT = 32
HIDDEN = 512
NUM_JOINTS = 21   # 24 - 3
LANE = 128        # TPU lane width


def _leaky_relu(x, slope=0.2):
    return jnp.where(x >= 0, x, slope * x)


def _round_up(x, m):
    return (x + m - 1) // m * m


def _fast_recip(x):
    """1/x via EUP approx reciprocal + one Newton step (keeps divides off the VALU)."""
    r = pl.reciprocal(x, approx=True)
    return r * (2.0 - x * r)


def _atan_nonneg(r):
    """atan(r) for r >= 0: Cephes-style range reduction + minimax polynomial.

    Uses only mul/add/recip/select so it lowers cleanly in Mosaic (no native atan2
    lowering needed).  ~1e-6 abs accurate with the Newton-refined reciprocal."""
    tan3pi8 = 2.414213562373095
    tanpi8 = 0.4142135623730951
    big = r > tan3pi8
    mid = (~big) & (r > tanpi8)
    inv_r = _fast_recip(jnp.maximum(r, 1e-30))
    inv_rp1 = _fast_recip(r + 1.0)
    x = jnp.where(big, -inv_r, jnp.where(mid, (r - 1.0) * inv_rp1, r))
    y = jnp.where(big, float(np.pi / 2), jnp.where(mid, float(np.pi / 4), 0.0))
    z = x * x
    p = 8.05374449538e-2 * z - 1.38776856032e-1
    p = p * z + 1.99777106478e-1
    p = p * z - 3.33329491539e-1
    p = p * z * x + x
    return y + p


def vposer_kernel(z_ref, w1_ref, b1_ref, w2_ref, b2_ref, w3_ref, b3_ref, aa_ref):
    # ---- decoder MLP: bf16 operands on the MXU, f32 accumulate, f32 elementwise ----
    zb = z_ref[...].astype(jnp.bfloat16)
    h = jnp.dot(zb, w1_ref[...], preferred_element_type=jnp.float32) + b1_ref[...]
    h = _leaky_relu(h)
    # Dropout is identity in eval mode.
    h = jnp.dot(h.astype(jnp.bfloat16), w2_ref[...],
                preferred_element_type=jnp.float32) + b2_ref[...]
    h = _leaky_relu(h)
    dec = jnp.dot(h.astype(jnp.bfloat16), w3_ref[...],
                  preferred_element_type=jnp.float32) + b3_ref[...]
    # dec: (tile_b, 128) densely packed:
    #   lanes [0:21]=a1x  [21:42]=a1y  [42:63]=a1z  [63:84]=a2x  [84:105]=a2y  [105:126]=a2z
    # Re-align each 21-lane component group to lane 0 with an XLU lane rotate
    # (jnp.roll semantics: element at lane 21*c moves to lane 0 with shift = -21*c mod 128).
    def comp(c):
        if c == 0:
            return dec
        return pltpu.roll(dec, (LANE - NUM_JOINTS * c) % LANE, 1)

    a1x, a1y, a1z, a2x, a2y, a2z = [comp(c) for c in range(6)]
    # Lanes >= 21 of each component hold wrapped-around garbage; all math below is
    # strictly per-lane and only lanes 0..20 are ever read back, so no masking needed.

    # ---- ContinousRotReprDecoder: 6D -> rotation matrix rows b1, b2, b3 ----
    inv_n1 = lax.rsqrt(jnp.maximum(a1x * a1x + a1y * a1y + a1z * a1z, 1e-24))
    b1x = a1x * inv_n1
    b1y = a1y * inv_n1
    b1z = a1z * inv_n1
    dot = b1x * a2x + b1y * a2y + b1z * a2z
    ux = a2x - dot * b1x
    uy = a2y - dot * b1y
    uz = a2z - dot * b1z
    inv_n2 = lax.rsqrt(jnp.maximum(ux * ux + uy * uy + uz * uz, 1e-24))
    b2x = ux * inv_n2
    b2y = uy * inv_n2
    b2z = uz * inv_n2
    # b3 = cross(b1, b2)
    b3x = b1y * b2z - b1z * b2y
    b3y = b1z * b2x - b1x * b2z
    b3z = b1x * b2y - b1y * b2x

    # ---- torchgeometry.rotation_matrix_to_quaternion (rmat_t rows are b1, b2, b3) ----
    # Masks first, then where-chains over shared sum/diff temps (small live cross-section).
    mask_d2 = b3z < 1e-6
    mask_d0_d1 = b1x > b2y
    mask_d0_nd1 = b1x < -b2y
    c0 = mask_d2 & mask_d0_d1
    c1 = mask_d2 & (~mask_d0_d1)
    c2 = (~mask_d2) & mask_d0_nd1

    def sel4(v0, v1, v2, v3):
        return jnp.where(c0, v0, jnp.where(c1, v1, jnp.where(c2, v2, v3)))

    sxy_p = b1y + b2x
    sxy_m = b1y - b2x
    syz_p = b2z + b3y
    syz_m = b2z - b3y
    szx_p = b3x + b1z
    szx_m = b3x - b1z
    pxy = b1x + b2y
    mxy = b1x - b2y
    tsel = sel4(1.0 + mxy - b3z, 1.0 - mxy - b3z, 1.0 - pxy + b3z, 1.0 + pxy + b3z)
    qw = sel4(syz_m, szx_m, sxy_m, tsel)
    qx = sel4(tsel, sxy_p, szx_p, syz_m)
    qy = sel4(sxy_p, tsel, syz_p, szx_m)
    qz = sel4(szx_p, syz_p, tsel, sxy_m)
    scale = 0.5 * lax.rsqrt(tsel)   # only the selected (positive) t gets the rsqrt
    qw = qw * scale
    qx = qx * scale
    qy = qy * scale
    qz = qz * scale

    # ---- quaternion -> angle-axis (torchgeometry), fused in-kernel ----
    # atan2(sin_th, cos_th) with the qw<0 branch folds to sign(cos_th)*atan(sin_th/|cos_th|).
    sin_sq = qx * qx + qy * qy + qz * qz
    sin_th = jnp.sqrt(sin_sq)
    cos_th = qw
    abs_cos = jnp.abs(cos_th)
    cos_zero = abs_cos == 0.0
    ratio = sin_th * _fast_recip(jnp.maximum(abs_cos, 1e-30))
    at = _atan_nonneg(ratio)
    half = jnp.where(cos_th >= 0.0, at, -at)
    half = jnp.where(cos_zero,
                     jnp.where(sin_th > 0.0, float(np.pi / 2), 0.0),
                     half)
    two_theta = 2.0 * half
    k = jnp.where(sin_sq > 0.0,
                  two_theta * _fast_recip(jnp.maximum(sin_th, 1e-30)),
                  2.0)

    # lane-dense output: [aa_x | aa_y | aa_z], each 128 lanes (joints in lanes 0..20)
    aa_ref[:, 0 * LANE:1 * LANE] = qx * k
    aa_ref[:, 1 * LANE:2 * LANE] = qy * k
    aa_ref[:, 2 * LANE:3 * LANE] = qz * k


def prepare_params(w1, b1, w2, b2, w3, b3):
    """Convert canonical f32 decoder params into the kernel layout:
    bf16 weights; last layer permuted component-major and packed into ONE 128-lane block
    (lanes c*21+j = component c of joint j, lanes 126..127 zero)."""
    J = NUM_JOINTS
    # Original 6D layout per joint j (view(-1,3,2)):
    #   column0 (a1) = cols [6j, 6j+2, 6j+4]; column1 (a2) = cols [6j+1, 6j+3, 6j+5]
    off = np.array([0, 2, 4, 1, 3, 5])
    perm = np.concatenate([6 * np.arange(J) + o for o in off])        # (126,) component-major
    w3_perm = jnp.asarray(w3)[:, perm]                                 # (HIDDEN, 126)
    b3_perm = jnp.asarray(b3)[:, perm]                                 # (1, 126)
    w3p = jnp.zeros((HIDDEN, LANE), jnp.float32).at[:, :6 * J].set(w3_perm)
    b3p = jnp.zeros((1, LANE), jnp.float32).at[:, :6 * J].set(b3_perm)
    return (
        w1.astype(jnp.bfloat16), b1.astype(jnp.float32),
        w2.astype(jnp.bfloat16), b2.astype(jnp.float32),
        w3p.astype(jnp.bfloat16), b3p.astype(jnp.float32),
    )


def vposer_forward(z, kernel_params):
    """Full Vposer.forward: (B, 32) latent -> (B, 69) body pose (axis-angle)."""
    B = z.shape[0]
    w1, b1, w2, b2, w3p, b3p = kernel_params
    J = NUM_JOINTS

    # Tile the batch so that (a) the epilogue's live f32 temporaries stay within the
    # vreg file (<=128 rows/tile), and (b) the grid has >=2 "parallel" steps once
    # B >= 16 so the second TensorCore on v7x gets work.
    tile_b = min(128, max(8, _round_up((B + 1) // 2, 8)))
    Bp = _round_up(B, tile_b)
    zf = z.astype(jnp.float32)
    if Bp != B:
        zf = jnp.pad(zf, ((0, Bp - B), (0, 0)))
    grid = (Bp // tile_b,)

    aa_packed = pl.pallas_call(
        vposer_kernel,
        out_shape=jax.ShapeDtypeStruct((Bp, 3 * LANE), jnp.float32),
        grid=grid,
        in_specs=[
            pl.BlockSpec((tile_b, LATENT), lambda i: (i, 0)),      # z (f32, cast in-kernel)
            pl.BlockSpec((LATENT, HIDDEN), lambda i: (0, 0)),      # w1 (bf16, resident)
            pl.BlockSpec((1, HIDDEN), lambda i: (0, 0)),           # b1 (f32)
            pl.BlockSpec((HIDDEN, HIDDEN), lambda i: (0, 0)),      # w2 (bf16, resident)
            pl.BlockSpec((1, HIDDEN), lambda i: (0, 0)),           # b2 (f32)
            pl.BlockSpec((HIDDEN, LANE), lambda i: (0, 0)),        # w3 packed (bf16, resident)
            pl.BlockSpec((1, LANE), lambda i: (0, 0)),             # b3 packed (f32)
        ],
        out_specs=pl.BlockSpec((tile_b, 3 * LANE), lambda i: (i, 0)),
        compiler_params=pltpu.CompilerParams(
            dimension_semantics=("parallel",)),   # batch axis -> both TCs on v7x
    )(zf, w1, b1, w2, b2, w3p, b3p)

    # Tiny layout-only epilogue (no compute): interleave to (B,21,3), append 2 zero joints.
    # TODO(synk): when latency-critical, keep the lane-dense (B, 3*128) tensor and fuse
    # this interleave into the downstream SMPL consumer instead of a separate XLA op.
    aa_packed = aa_packed[:B]
    aa = jnp.stack(
        [aa_packed[:, 0 * LANE:0 * LANE + J],
         aa_packed[:, 1 * LANE:1 * LANE + J],
         aa_packed[:, 2 * LANE:2 * LANE + J]],
        axis=-1)                                               # (B, 21, 3)
    zero_pose = jnp.zeros((B, 2, 3), jnp.float32)
    body_pose = jnp.concatenate([aa, zero_pose], axis=1)       # (B, 23, 3)
    return body_pose.reshape(B, -1)                            # (B, 69)


def init_params(key):
    ks = jax.random.split(key, 6)
    w1 = jax.random.normal(ks[0], (LATENT, HIDDEN), jnp.float32) / np.sqrt(LATENT)
    b1 = jax.random.normal(ks[1], (1, HIDDEN), jnp.float32) * 0.01
    w2 = jax.random.normal(ks[2], (HIDDEN, HIDDEN), jnp.float32) / np.sqrt(HIDDEN)
    b2 = jax.random.normal(ks[3], (1, HIDDEN), jnp.float32) * 0.01
    w3 = jax.random.normal(ks[4], (HIDDEN, 6 * NUM_JOINTS), jnp.float32) / np.sqrt(HIDDEN)
    b3 = jax.random.normal(ks[5], (1, 6 * NUM_JOINTS), jnp.float32) * 0.01
    return w1, b1, w2, b2, w3, b3


def vposer_reference(z, w1, b1, w2, b2, w3, b3):
    """Pure-JAX reference mirroring the PyTorch math, quantizing the matmul operands to
    bf16 at the same points the kernel does (so it checks the kernel, not the cast)."""
    B = z.shape[0]
    f32 = jnp.float32
    q = lambda x: x.astype(jnp.bfloat16).astype(f32)
    h = _leaky_relu(q(z) @ q(w1) + b1)
    h = _leaky_relu(q(h) @ q(w2) + b2)
    dec = (q(h) @ q(w3) + b3).reshape(B * NUM_JOINTS, 3, 2)
    a1, a2 = dec[:, :, 0], dec[:, :, 1]
    b1v = a1 / jnp.maximum(jnp.linalg.norm(a1, axis=1, keepdims=True), 1e-12)
    dotv = jnp.sum(b1v * a2, axis=1, keepdims=True)
    u = a2 - dotv * b1v
    b2v = u / jnp.maximum(jnp.linalg.norm(u, axis=1, keepdims=True), 1e-12)
    b3v = jnp.cross(b1v, b2v)
    # rmat_t rows = b1, b2, b3
    r = lambda i, j: [b1v, b2v, b3v][i][:, j]
    eps = 1e-6
    m_d2 = r(2, 2) < eps
    m_01 = r(0, 0) > r(1, 1)
    m_0n1 = r(0, 0) < -r(1, 1)
    t0 = 1 + r(0, 0) - r(1, 1) - r(2, 2)
    q0 = jnp.stack([r(1, 2) - r(2, 1), t0, r(0, 1) + r(1, 0), r(2, 0) + r(0, 2)], -1)
    t1 = 1 - r(0, 0) + r(1, 1) - r(2, 2)
    q1 = jnp.stack([r(2, 0) - r(0, 2), r(0, 1) + r(1, 0), t1, r(1, 2) + r(2, 1)], -1)
    t2 = 1 - r(0, 0) - r(1, 1) + r(2, 2)
    q2 = jnp.stack([r(0, 1) - r(1, 0), r(2, 0) + r(0, 2), r(1, 2) + r(2, 1), t2], -1)
    t3 = 1 + r(0, 0) + r(1, 1) + r(2, 2)
    q3 = jnp.stack([t3, r(1, 2) - r(2, 1), r(2, 0) - r(0, 2), r(0, 1) - r(1, 0)], -1)
    c0 = (m_d2 & m_01)[:, None]
    c1 = (m_d2 & ~m_01)[:, None]
    c2 = (~m_d2 & m_0n1)[:, None]
    qv = jnp.where(c0, q0, jnp.where(c1, q1, jnp.where(c2, q2, q3)))
    tsel = jnp.where(c0, t0[:, None], jnp.where(c1, t1[:, None],
                     jnp.where(c2, t2[:, None], t3[:, None])))
    qv = 0.5 * qv / jnp.sqrt(tsel)
    qw, qx, qy, qz = qv[:, 0], qv[:, 1], qv[:, 2], qv[:, 3]
    sin_sq = qx * qx + qy * qy + qz * qz
    sin_th = jnp.sqrt(sin_sq)
    two_theta = 2.0 * jnp.where(qw < 0, jnp.arctan2(-sin_th, -qw), jnp.arctan2(sin_th, qw))
    k = jnp.where(sin_sq > 0, two_theta / sin_th, 2.0)
    aa = jnp.stack([qx * k, qy * k, qz * k], -1).reshape(B, NUM_JOINTS, 3)
    zero_pose = jnp.zeros((B, 2, 3), jnp.float32)
    return jnp.concatenate([aa, zero_pose], axis=1).reshape(B, -1)


if __name__ == "__main__":
    key = jax.random.PRNGKey(0)
    k_param, k_z = jax.random.split(key)
    w1, b1, w2, b2, w3, b3 = init_params(k_param)
    kernel_params = prepare_params(w1, b1, w2, b2, w3, b3)

    B = 4
    z = jax.random.normal(k_z, (B, LATENT), jnp.float32)

    out = jax.block_until_ready(vposer_forward(z, kernel_params))

    assert out.shape == (B, 69), out.shape
    assert bool(jnp.all(jnp.isfinite(out)))

    ref = jax.block_until_ready(vposer_reference(z, w1, b1, w2, b2, w3, b3))
    max_err = float(jnp.max(jnp.abs(out - ref)))
    if max_err > 5e-3:
        raise AssertionError(f"mismatch vs reference, max abs err = {max_err}")

    print("KERNEL_OK")
</pallas_src>

<mosaic_0001>
module attributes {stable_mosaic.version = 11 : i64} {
  func.func @vposer_kernel(%arg0: i32, %arg1: memref<8x32xf32, #tpu.memory_space<vmem>>, %arg2: memref<32x512xbf16, #tpu.memory_space<vmem>>, %arg3: memref<1x512xf32, #tpu.memory_space<vmem>>, %arg4: memref<512x512xbf16, #tpu.memory_space<vmem>>, %arg5: memref<1x512xf32, #tpu.memory_space<vmem>>, %arg6: memref<512x128xbf16, #tpu.memory_space<vmem>>, %arg7: memref<1x128xf32, #tpu.memory_space<vmem>>, %arg8: memref<8x384xf32, #tpu.memory_space<vmem>>) attributes {dimension_semantics = [#tpu.dimension_semantics<parallel>], iteration_bounds = array<i64: 1>, scalar_prefetch = 0 : i64, scratch_operands = 0 : i64, tpu.core_type = #tpu.core_type<tc>, window_params = [{transform_indices = @transform_0, window_bounds = array<i64: 8, 32>}, {pipeline_mode = #tpu.pipeline_mode<synchronous>, transform_indices = @transform_1, window_bounds = array<i64: 32, 512>}, {pipeline_mode = #tpu.pipeline_mode<synchronous>, transform_indices = @transform_2, window_bounds = array<i64: 1, 512>}, {pipeline_mode = #tpu.pipeline_mode<synchronous>, transform_indices = @transform_3, window_bounds = array<i64: 512, 512>}, {pipeline_mode = #tpu.pipeline_mode<synchronous>, transform_indices = @transform_4, window_bounds = array<i64: 1, 512>}, {pipeline_mode = #tpu.pipeline_mode<synchronous>, transform_indices = @transform_5, window_bounds = array<i64: 512, 128>}, {pipeline_mode = #tpu.pipeline_mode<synchronous>, transform_indices = @transform_6, window_bounds = array<i64: 1, 128>}, {transform_indices = @transform_7, window_bounds = array<i64: 8, 384>}]} {
    %c0 = arith.constant 0 : index
    %c0_0 = arith.constant 0 : index
    %0 = vector.load %arg1[%c0, %c0_0] : memref<8x32xf32, #tpu.memory_space<vmem>>, vector<8x32xf32>
    %1 = arith.truncf %0 : vector<8x32xf32> to vector<8x32xbf16>
    %c0_1 = arith.constant 0 : index
    %c0_2 = arith.constant 0 : index
    %2 = vector.load %arg2[%c0_1, %c0_2] : memref<32x512xbf16, #tpu.memory_space<vmem>>, vector<32x512xbf16>
    %cst = arith.constant dense<0.000000e+00> : vector<8x512xf32>
    %3 = tpu.matmul %1, %2, %cst {dimension_numbers = #tpu.dot_dimension_numbers<[1], [0], [0], [1], [0, 0, 1, 1], [], []>} : vector<8x32xbf16>, vector<32x512xbf16>, vector<8x512xf32> -> vector<8x512xf32>
    %c0_3 = arith.constant 0 : index
    %c0_4 = arith.constant 0 : index
    %4 = vector.load %arg3[%c0_3, %c0_4] : memref<1x512xf32, #tpu.memory_space<vmem>>, vector<1x512xf32>
    %5 = vector.broadcast %4 : vector<1x512xf32> to vector<8x512xf32>
    %6 = arith.addf %3, %5 : vector<8x512xf32>
    %cst_5 = arith.constant 0.000000e+00 : f32
    %7 = vector.broadcast %cst_5 : f32 to vector<8x512xf32>
    %8 = arith.cmpf oge, %6, %7 : vector<8x512xf32>
    %cst_6 = arith.constant 2.000000e-01 : f32
    %9 = vector.broadcast %cst_6 : f32 to vector<8x512xf32>
    %10 = arith.mulf %9, %6 : vector<8x512xf32>
    %11 = arith.select %8, %6, %10 : vector<8x512xi1>, vector<8x512xf32>
    %12 = arith.truncf %11 : vector<8x512xf32> to vector<8x512xbf16>
    %c0_7 = arith.constant 0 : index
    %c0_8 = arith.constant 0 : index
    %13 = vector.load %arg4[%c0_7, %c0_8] : memref<512x512xbf16, #tpu.memory_space<vmem>>, vector<512x512xbf16>
    %cst_9 = arith.constant dense<0.000000e+00> : vector<8x512xf32>
    %14 = tpu.matmul %12, %13, %cst_9 {dimension_numbers = #tpu.dot_dimension_numbers<[1], [0], [0], [1], [0, 0, 1, 1], [], []>} : vector<8x512xbf16>, vector<512x512xbf16>, vector<8x512xf32> -> vector<8x512xf32>
    %c0_10 = arith.constant 0 : index
    %c0_11 = arith.constant 0 : index
    %15 = vector.load %arg5[%c0_10, %c0_11] : memref<1x512xf32, #tpu.memory_space<vmem>>, vector<1x512xf32>
    %16 = vector.broadcast %15 : vector<1x512xf32> to vector<8x512xf32>
    %17 = arith.addf %14, %16 : vector<8x512xf32>
    %cst_12 = arith.constant 0.000000e+00 : f32
    %18 = vector.broadcast %cst_12 : f32 to vector<8x512xf32>
    %19 = arith.cmpf oge, %17, %18 : vector<8x512xf32>
    %cst_13 = arith.constant 2.000000e-01 : f32
    %20 = vector.broadcast %cst_13 : f32 to vector<8x512xf32>
    %21 = arith.mulf %20, %17 : vector<8x512xf32>
    %22 = arith.select %19, %17, %21 : vector<8x512xi1>, vector<8x512xf32>
    %23 = arith.truncf %22 : vector<8x512xf32> to vector<8x512xbf16>
    %c0_14 = arith.constant 0 : index
    %c0_15 = arith.constant 0 : index
    %24 = vector.load %arg6[%c0_14, %c0_15] : memref<512x128xbf16, #tpu.memory_space<vmem>>, vector<512x128xbf16>
    %cst_16 = arith.constant dense<0.000000e+00> : vector<8x128xf32>
    %25 = tpu.matmul %23, %24, %cst_16 {dimension_numbers = #tpu.dot_dimension_numbers<[1], [0], [0], [1], [0, 0, 1, 1], [], []>} : vector<8x512xbf16>, vector<512x128xbf16>, vector<8x128xf32> -> vector<8x128xf32>
    %c0_17 = arith.constant 0 : index
    %c0_18 = arith.constant 0 : index
    %26 = vector.load %arg7[%c0_17, %c0_18] : memref<1x128xf32, #tpu.memory_space<vmem>>, vector<1x128xf32>
    %27 = vector.broadcast %26 : vector<1x128xf32> to vector<8x128xf32>
    %28 = arith.addf %25, %27 : vector<8x128xf32>
    %c107_i32 = arith.constant 107 : i32
    %29 = tpu.dynamic_rotate %28 by %c107_i32 dim 1 : vector<8x128xf32>, i32 -> vector<8x128xf32>
    %c86_i32 = arith.constant 86 : i32
    %30 = tpu.dynamic_rotate %28 by %c86_i32 dim 1 : vector<8x128xf32>, i32 -> vector<8x128xf32>
    %c65_i32 = arith.constant 65 : i32
    %31 = tpu.dynamic_rotate %28 by %c65_i32 dim 1 : vector<8x128xf32>, i32 -> vector<8x128xf32>
    %c44_i32 = arith.constant 44 : i32
    %32 = tpu.dynamic_rotate %28 by %c44_i32 dim 1 : vector<8x128xf32>, i32 -> vector<8x128xf32>
    %c23_i32 = arith.constant 23 : i32
    %33 = tpu.dynamic_rotate %28 by %c23_i32 dim 1 : vector<8x128xf32>, i32 -> vector<8x128xf32>
    %34 = arith.mulf %28, %28 : vector<8x128xf32>
    %35 = arith.mulf %29, %29 : vector<8x128xf32>
    %36 = arith.addf %34, %35 : vector<8x128xf32>
    %37 = arith.mulf %30, %30 : vector<8x128xf32>
    %38 = arith.addf %36, %37 : vector<8x128xf32>
    %cst_19 = arith.constant 1.000000e-24 : f32
    %39 = vector.broadcast %cst_19 : f32 to vector<8x128xf32>
    %40 = arith.maximumf %38, %39 : vector<8x128xf32>
    %41 = math.rsqrt %40 : vector<8x128xf32>
    %42 = arith.mulf %28, %41 : vector<8x128xf32>
    %43 = arith.mulf %29, %41 : vector<8x128xf32>
    %44 = arith.mulf %30, %41 : vector<8x128xf32>
    %45 = arith.mulf %42, %31 : vector<8x128xf32>
    %46 = arith.mulf %43, %32 : vector<8x128xf32>
    %47 = arith.addf %45, %46 : vector<8x128xf32>
    %48 = arith.mulf %44, %33 : vector<8x128xf32>
    %49 = arith.addf %47, %48 : vector<8x128xf32>
    %50 = arith.mulf %49, %42 : vector<8x128xf32>
    %51 = arith.subf %31, %50 : vector<8x128xf32>
    %52 = arith.mulf %49, %43 : vector<8x128xf32>
    %53 = arith.subf %32, %52 : vector<8x128xf32>
    %54 = arith.mulf %49, %44 : vector<8x128xf32>
    %55 = arith.subf %33, %54 : vector<8x128xf32>
    %56 = arith.mulf %51, %51 : vector<8x128xf32>
    %57 = arith.mulf %53, %53 : vector<8x128xf32>
    %58 = arith.addf %56, %57 : vector<8x128xf32>
    %59 = arith.mulf %55, %55 : vector<8x128xf32>
    %60 = arith.addf %58, %59 : vector<8x128xf32>
    %cst_20 = arith.constant 1.000000e-24 : f32
    %61 = vector.broadcast %cst_20 : f32 to vector<8x128xf32>
    %62 = arith.maximumf %60, %61 : vector<8x128xf32>
    %63 = math.rsqrt %62 : vector<8x128xf32>
    %64 = arith.mulf %51, %63 : vector<8x128xf32>
    %65 = arith.mulf %53, %63 : vector<8x128xf32>
    %66 = arith.mulf %55, %63 : vector<8x128xf32>
    %67 = arith.mulf %43, %66 : vector<8x128xf32>
    %68 = arith.mulf %44, %65 : vector<8x128xf32>
    %69 = arith.subf %67, %68 : vector<8x128xf32>
    %70 = arith.mulf %44, %64 : vector<8x128xf32>
    %71 = arith.mulf %42, %66 : vector<8x128xf32>
    %72 = arith.subf %70, %71 : vector<8x128xf32>
    %73 = arith.mulf %42, %65 : vector<8x128xf32>
    %74 = arith.mulf %43, %64 : vector<8x128xf32>
    %75 = arith.subf %73, %74 : vector<8x128xf32>
    %cst_21 = arith.constant 9.99999997E-7 : f32
    %76 = vector.broadcast %cst_21 : f32 to vector<8x128xf32>
    %77 = arith.cmpf olt, %75, %76 : vector<8x128xf32>
    %78 = arith.cmpf ogt, %42, %65 : vector<8x128xf32>
    %cst_22 = arith.constant 0.000000e+00 : f32
    %79 = vector.broadcast %cst_22 : f32 to vector<8x128xf32>
    %80 = arith.subf %79, %65 : vector<8x128xf32>
    %81 = arith.cmpf olt, %42, %80 : vector<8x128xf32>
    %82 = arith.andi %77, %78 : vector<8x128xi1>
    %cst_23 = arith.constant dense<true> : vector<8x128xi1>
    %83 = arith.xori %78, %cst_23 : vector<8x128xi1>
    %84 = arith.andi %77, %83 : vector<8x128xi1>
    %cst_24 = arith.constant dense<true> : vector<8x128xi1>
    %85 = arith.xori %77, %cst_24 : vector<8x128xi1>
    %86 = arith.andi %85, %81 : vector<8x128xi1>
    %87 = arith.addf %43, %64 : vector<8x128xf32>
    %88 = arith.subf %43, %64 : vector<8x128xf32>
    %89 = arith.addf %66, %72 : vector<8x128xf32>
    %90 = arith.subf %66, %72 : vector<8x128xf32>
    %91 = arith.addf %69, %44 : vector<8x128xf32>
    %92 = arith.subf %69, %44 : vector<8x128xf32>
    %93 = arith.addf %42, %65 : vector<8x128xf32>
    %94 = arith.subf %42, %65 : vector<8x128xf32>
    %cst_25 = arith.constant 1.000000e+00 : f32
    %95 = vector.broadcast %cst_25 : f32 to vector<8x128xf32>
    %96 = arith.addf %95, %94 : vector<8x128xf32>
    %97 = arith.subf %96, %75 : vector<8x128xf32>
    %cst_26 = arith.constant 1.000000e+00 : f32
    %98 = vector.broadcast %cst_26 : f32 to vector<8x128xf32>
    %99 = arith.subf %98, %94 : vector<8x128xf32>
    %100 = arith.subf %99, %75 : vector<8x128xf32>
    %cst_27 = arith.constant 1.000000e+00 : f32
    %101 = vector.broadcast %cst_27 : f32 to vector<8x128xf32>
    %102 = arith.subf %101, %93 : vector<8x128xf32>
    %103 = arith.addf %102, %75 : vector<8x128xf32>
    %cst_28 = arith.constant 1.000000e+00 : f32
    %104 = vector.broadcast %cst_28 : f32 to vector<8x128xf32>
    %105 = arith.addf %104, %93 : vector<8x128xf32>
    %106 = arith.addf %105, %75 : vector<8x128xf32>
    %107 = arith.select %86, %103, %106 : vector<8x128xi1>, vector<8x128xf32>
    %108 = arith.select %84, %100, %107 : vector<8x128xi1>, vector<8x128xf32>
    %109 = arith.select %82, %97, %108 : vector<8x128xi1>, vector<8x128xf32>
    %110 = arith.select %86, %88, %109 : vector<8x128xi1>, vector<8x128xf32>
    %111 = arith.select %84, %92, %110 : vector<8x128xi1>, vector<8x128xf32>
    %112 = arith.select %82, %90, %111 : vector<8x128xi1>, vector<8x128xf32>
    %113 = arith.select %86, %91, %90 : vector<8x128xi1>, vector<8x128xf32>
    %114 = arith.select %84, %87, %113 : vector<8x128xi1>, vector<8x128xf32>
    %115 = arith.select %82, %109, %114 : vector<8x128xi1>, vector<8x128xf32>
    %116 = arith.select %86, %89, %92 : vector<8x128xi1>, vector<8x128xf32>
    %117 = arith.select %84, %109, %116 : vector<8x128xi1>, vector<8x128xf32>
    %118 = arith.select %82, %87, %117 : vector<8x128xi1>, vector<8x128xf32>
    %119 = arith.select %86, %109, %88 : vector<8x128xi1>, vector<8x128xf32>
    %120 = arith.select %84, %89, %119 : vector<8x128xi1>, vector<8x128xf32>
    %121 = arith.select %82, %91, %120 : vector<8x128xi1>, vector<8x128xf32>
    %122 = math.rsqrt %109 : vector<8x128xf32>
    %cst_29 = arith.constant 5.000000e-01 : f32
    %123 = vector.broadcast %cst_29 : f32 to vector<8x128xf32>
    %124 = arith.mulf %123, %122 : vector<8x128xf32>
    %125 = arith.mulf %112, %124 : vector<8x128xf32>
    %126 = arith.mulf %115, %124 : vector<8x128xf32>
    %127 = arith.mulf %118, %124 : vector<8x128xf32>
    %128 = arith.mulf %121, %124 : vector<8x128xf32>
    %129 = arith.mulf %126, %126 : vector<8x128xf32>
    %130 = arith.mulf %127, %127 : vector<8x128xf32>
    %131 = arith.addf %129, %130 : vector<8x128xf32>
    %132 = arith.mulf %128, %128 : vector<8x128xf32>
    %133 = arith.addf %131, %132 : vector<8x128xf32>
    %134 = math.sqrt %133 : vector<8x128xf32>
    %135 = math.absf %125 : vector<8x128xf32>
    %cst_30 = arith.constant 0.000000e+00 : f32
    %136 = vector.broadcast %cst_30 : f32 to vector<8x128xf32>
    %137 = arith.cmpf oeq, %135, %136 : vector<8x128xf32>
    %cst_31 = arith.constant 1.000000e-30 : f32
    %138 = vector.broadcast %cst_31 : f32 to vector<8x128xf32>
    %139 = arith.maximumf %135, %138 : vector<8x128xf32>
    %140 = tpu.reciprocal %139 {approx = true} : vector<8x128xf32> -> vector<8x128xf32>
    %141 = arith.mulf %139, %140 : vector<8x128xf32>
    %cst_32 = arith.constant 2.000000e+00 : f32
    %142 = vector.broadcast %cst_32 : f32 to vector<8x128xf32>
    %143 = arith.subf %142, %141 : vector<8x128xf32>
    %144 = arith.mulf %140, %143 : vector<8x128xf32>
    %145 = arith.mulf %134, %144 : vector<8x128xf32>
    %cst_33 = arith.constant 2.41421366 : f32
    %146 = vector.broadcast %cst_33 : f32 to vector<8x128xf32>
    %147 = arith.cmpf ogt, %145, %146 : vector<8x128xf32>
    %cst_34 = arith.constant dense<true> : vector<8x128xi1>
    %148 = arith.xori %147, %cst_34 : vector<8x128xi1>
    %cst_35 = arith.constant 0.414213568 : f32
    %149 = vector.broadcast %cst_35 : f32 to vector<8x128xf32>
    %150 = arith.cmpf ogt, %145, %149 : vector<8x128xf32>
    %151 = arith.andi %148, %150 : vector<8x128xi1>
    %cst_36 = arith.constant 1.000000e-30 : f32
    %152 = vector.broadcast %cst_36 : f32 to vector<8x128xf32>
    %153 = arith.maximumf %145, %152 : vector<8x128xf32>
    %154 = tpu.reciprocal %153 {approx = true} : vector<8x128xf32> -> vector<8x128xf32>
    %155 = arith.mulf %153, %154 : vector<8x128xf32>
    %cst_37 = arith.constant 2.000000e+00 : f32
    %156 = vector.broadcast %cst_37 : f32 to vector<8x128xf32>
    %157 = arith.subf %156, %155 : vector<8x128xf32>
    %158 = arith.mulf %154, %157 : vector<8x128xf32>
    %cst_38 = arith.constant 1.000000e+00 : f32
    %159 = vector.broadcast %cst_38 : f32 to vector<8x128xf32>
    %160 = arith.addf %145, %159 : vector<8x128xf32>
    %161 = tpu.reciprocal %160 {approx = true} : vector<8x128xf32> -> vector<8x128xf32>
    %162 = arith.mulf %160, %161 : vector<8x128xf32>
    %cst_39 = arith.constant 2.000000e+00 : f32
    %163 = vector.broadcast %cst_39 : f32 to vector<8x128xf32>
    %164 = arith.subf %163, %162 : vector<8x128xf32>
    %165 = arith.mulf %161, %164 : vector<8x128xf32>
    %cst_40 = arith.constant 0.000000e+00 : f32
    %166 = vector.broadcast %cst_40 : f32 to vector<8x128xf32>
    %167 = arith.subf %166, %158 : vector<8x128xf32>
    %cst_41 = arith.constant 1.000000e+00 : f32
    %168 = vector.broadcast %cst_41 : f32 to vector<8x128xf32>
    %169 = arith.subf %145, %168 : vector<8x128xf32>
    %170 = arith.mulf %169, %165 : vector<8x128xf32>
    %171 = arith.select %151, %170, %145 : vector<8x128xi1>, vector<8x128xf32>
    %172 = arith.select %147, %167, %171 : vector<8x128xi1>, vector<8x128xf32>
    %cst_42 = arith.constant 0.785398185 : f32
    %cst_43 = arith.constant 0.000000e+00 : f32
    %173 = vector.broadcast %cst_42 : f32 to vector<8x128xf32>
    %174 = vector.broadcast %cst_43 : f32 to vector<8x128xf32>
    %175 = arith.select %151, %173, %174 : vector<8x128xi1>, vector<8x128xf32>
    %cst_44 = arith.constant 1.57079637 : f32
    %176 = vector.broadcast %cst_44 : f32 to vector<8x128xf32>
    %177 = arith.select %147, %176, %175 : vector<8x128xi1>, vector<8x128xf32>
    %178 = arith.mulf %172, %172 : vector<8x128xf32>
    %cst_45 = arith.constant 0.0805374458 : f32
    %179 = vector.broadcast %cst_45 : f32 to vector<8x128xf32>
    %180 = arith.mulf %179, %178 : vector<8x128xf32>
    %cst_46 = arith.constant 0.138776854 : f32
    %181 = vector.broadcast %cst_46 : f32 to vector<8x128xf32>
    %182 = arith.subf %180, %181 : vector<8x128xf32>
    %183 = arith.mulf %182, %178 : vector<8x128xf32>
    %cst_47 = arith.constant 0.199777111 : f32
    %184 = vector.broadcast %cst_47 : f32 to vector<8x128xf32>
    %185 = arith.addf %183, %184 : vector<8x128xf32>
    %186 = arith.mulf %185, %178 : vector<8x128xf32>
    %cst_48 = arith.constant 0.333329499 : f32
    %187 = vector.broadcast %cst_48 : f32 to vector<8x128xf32>
    %188 = arith.subf %186, %187 : vector<8x128xf32>
    %189 = arith.mulf %188, %178 : vector<8x128xf32>
    %190 = arith.mulf %189, %172 : vector<8x128xf32>
    %191 = arith.addf %190, %172 : vector<8x128xf32>
    %192 = arith.addf %177, %191 : vector<8x128xf32>
    %cst_49 = arith.constant 0.000000e+00 : f32
    %193 = vector.broadcast %cst_49 : f32 to vector<8x128xf32>
    %194 = arith.cmpf oge, %125, %193 : vector<8x128xf32>
    %cst_50 = arith.constant 0.000000e+00 : f32
    %195 = vector.broadcast %cst_50 : f32 to vector<8x128xf32>
    %196 = arith.subf %195, %192 : vector<8x128xf32>
    %197 = arith.select %194, %192, %196 : vector<8x128xi1>, vector<8x128xf32>
    %cst_51 = arith.constant 0.000000e+00 : f32
    %198 = vector.broadcast %cst_51 : f32 to vector<8x128xf32>
    %199 = arith.cmpf ogt, %134, %198 : vector<8x128xf32>
    %cst_52 = arith.constant 1.57079637 : f32
    %cst_53 = arith.constant 0.000000e+00 : f32
    %200 = vector.broadcast %cst_52 : f32 to vector<8x128xf32>
    %201 = vector.broadcast %cst_53 : f32 to vector<8x128xf32>
    %202 = arith.select %199, %200, %201 : vector<8x128xi1>, vector<8x128xf32>
    %203 = arith.select %137, %202, %197 : vector<8x128xi1>, vector<8x128xf32>
    %cst_54 = arith.constant 2.000000e+00 : f32
    %204 = vector.broadcast %cst_54 : f32 to vector<8x128xf32>
    %205 = arith.mulf %204, %203 : vector<8x128xf32>
    %cst_55 = arith.constant 0.000000e+00 : f32
    %206 = vector.broadcast %cst_55 : f32 to vector<8x128xf32>
    %207 = arith.cmpf ogt, %133, %206 : vector<8x128xf32>
    %cst_56 = arith.constant 1.000000e-30 : f32
    %208 = vector.broadcast %cst_56 : f32 to vector<8x128xf32>
    %209 = arith.maximumf %134, %208 : vector<8x128xf32>
    %210 = tpu.reciprocal %209 {approx = true} : vector<8x128xf32> -> vector<8x128xf32>
    %211 = arith.mulf %209, %210 : vector<8x128xf32>
    %cst_57 = arith.constant 2.000000e+00 : f32
    %212 = vector.broadcast %cst_57 : f32 to vector<8x128xf32>
    %213 = arith.subf %212, %211 : vector<8x128xf32>
    %214 = arith.mulf %210, %213 : vector<8x128xf32>
    %215 = arith.mulf %205, %214 : vector<8x128xf32>
    %cst_58 = arith.constant 2.000000e+00 : f32
    %216 = vector.broadcast %cst_58 : f32 to vector<8x128xf32>
    %217 = arith.select %207, %215, %216 : vector<8x128xi1>, vector<8x128xf32>
    %218 = arith.mulf %126, %217 : vector<8x128xf32>
    %c0_59 = arith.constant 0 : index
    %c0_60 = arith.constant 0 : index
    %219 = vector.load %arg8[%c0_59, %c0_60] : memref<8x384xf32, #tpu.memory_space<vmem>>, vector<8x128xf32>
    tpu.vector_store %arg8[%c0_59, %c0_60], %218 {strides = array<i32>} : memref<8x384xf32, #tpu.memory_space<vmem>>, vector<8x128xf32>,
    %220 = arith.mulf %127, %217 : vector<8x128xf32>
    %c0_61 = arith.constant 0 : index
    %c128 = arith.constant 128 : index
    %221 = vector.load %arg8[%c0_61, %c128] : memref<8x384xf32, #tpu.memory_space<vmem>>, vector<8x128xf32>
    tpu.vector_store %arg8[%c0_61, %c128], %220 {strides = array<i32>} : memref<8x384xf32, #tpu.memory_space<vmem>>, vector<8x128xf32>,
    %222 = arith.mulf %128, %217 : vector<8x128xf32>
    %c0_62 = arith.constant 0 : index
    %c256 = arith.constant 256 : index
    %223 = vector.load %arg8[%c0_62, %c256] : memref<8x384xf32, #tpu.memory_space<vmem>>, vector<8x128xf32>
    tpu.vector_store %arg8[%c0_62, %c256], %222 {strides = array<i32>} : memref<8x384xf32, #tpu.memory_space<vmem>>, vector<8x128xf32>,
    return
  }
  func.func @transform_0(%arg0: i32) -> (i32, i32) {
    %c0_i32 = arith.constant 0 : i32
    %c0_i32_0 = arith.constant 0 : i32
    return %arg0, %c0_i32 : i32, i32
  }
  func.func @transform_1(%arg0: i32) -> (i32, i32) {
    %c0_i32 = arith.constant 0 : i32
    %c0_i32_0 = arith.constant 0 : i32
    %c0_i32_1 = arith.constant 0 : i32
    return %c0_i32, %c0_i32_0 : i32, i32
  }
  func.func @transform_2(%arg0: i32) -> (i32, i32) {
    %c0_i32 = arith.constant 0 : i32
    %c0_i32_0 = arith.constant 0 : i32
    %c0_i32_1 = arith.constant 0 : i32
    return %c0_i32, %c0_i32_0 : i32, i32
  }
  func.func @transform_3(%arg0: i32) -> (i32, i32) {
    %c0_i32 = arith.constant 0 : i32
    %c0_i32_0 = arith.constant 0 : i32
    %c0_i32_1 = arith.constant 0 : i32
    return %c0_i32, %c0_i32_0 : i32, i32
  }
  func.func @transform_4(%arg0: i32) -> (i32, i32) {
    %c0_i32 = arith.constant 0 : i32
    %c0_i32_0 = arith.constant 0 : i32
    %c0_i32_1 = arith.constant 0 : i32
    return %c0_i32, %c0_i32_0 : i32, i32
  }
  func.func @transform_5(%arg0: i32) -> (i32, i32) {
    %c0_i32 = arith.constant 0 : i32
    %c0_i32_0 = arith.constant 0 : i32
    %c0_i32_1 = arith.constant 0 : i32
    return %c0_i32, %c0_i32_0 : i32, i32
  }
  func.func @transform_6(%arg0: i32) -> (i32, i32) {
    %c0_i32 = arith.constant 0 : i32
    %c0_i32_0 = arith.constant 0 : i32
    %c0_i32_1 = arith.constant 0 : i32
    return %c0_i32, %c0_i32_0 : i32, i32
  }
  func.func @transform_7(%arg0: i32) -> (i32, i32) {
    %c0_i32 = arith.constant 0 : i32
    %c0_i32_0 = arith.constant 0 : i32
    return %arg0, %c0_i32 : i32, i32
  }
}

</mosaic_0001>

<bundles_post_ra>
// kernel: tpu_custom_call.1
= control target key start
LH: loop header
LB: loop body
LE: loop exit
PB: predicated region body
PF: predicated region fallthrough
CT: control target
= control target key end

     0   :  { %12 = vsyncpa [#allocation3], 0  ;;  %s2635_s0 = inlined_call_operand.hbm [shape: f32[8,32], index: 0, kind: input, shape index: {}]   ;;  %s2636_s1 = inlined_call_operand.hbm [shape: bf16[32,512], index: 1, kind: input, shape index: {}]   ;;  %s2637_s2 = inlined_call_operand.vmem [shape: f32[1,512], index: 2, kind: input, shape index: {}]   ;;  %s2638_s3 = inlined_call_operand.hbm [shape: bf16[512,512], index: 3, kind: input, shape index: {}]   ;;  %s2639_s4 = inlined_call_operand.vmem [shape: f32[1,512], index: 4, kind: input, shape index: {}]   ;;  %s2640_s5 = inlined_call_operand.hbm [shape: bf16[512,128], index: 5, kind: input, shape index: {}]   ;;  %s2641_s6 = inlined_call_operand.vmem [shape: f32[1,128], index: 6, kind: input, shape index: {}]   ;;  %s2642_s7 = inlined_call_operand.hbm [shape: f32[8,384], index: 7, kind: output, shape index: {}]  }
   0x1   :  { %13 = vsyncpa [#allocation6], 0 }
   0x2   :  { %14 = vsyncpa [#allocation9], 0 }
   0x3   :  { %15 = vsyncpa [#allocation4], 0  ;;  %s2371_s24 = smov [#allocation5]   ;;  %s2253_s28 = scalar_lea.hbm %s2636_s1, 1024 }
   0x4   :  { %s31_s25 = sshll.u32 %s2371_s24, 4  ;;  %p2254_p0 = scmp.ne.s32.totalorder %s2636_s1, %s2253_s28  ;;  %s32_s25 = int_to_ptr.vmem [resolvable:$true] %s31_s25 }
   0x5   :  { %p2257_p1 = scmp.lt.u32.totalorder %s2253_s28, %s2636_s1 }
   0x7   :  { %p2259_p2 = pnand %p2257_p1, %p2254_p0 }
   0x9   :  { %2262 = shalt.err (!%p2259_p2)
}
   0xa   :  { %s2263_s10 = scalar_lea.vmem %s32_s25, 1024  ;;  %p2268_p4 = scmp.lt.s32.totalorder %s32_s25, %s32_s25 }
   0xb   :  { %p2264_p3 = scmp.ne.s32.totalorder %s32_s25, %s2263_s10  ;;  %p2269_p5 = scmp.lt.s32.totalorder %s2263_s10, %s2263_s10 }
   0xd   :  { %p2270_p6 = por %p2269_p5, %p2268_p4 }
   0xf   :  { %p2271_p7 = pnand %p2270_p6, %p2264_p3 }
  0x11   :  { %2274 = shalt.err (!%p2271_p7)
}
  0x12   :  { %s2372_s11 = smov 256   ;;  %s2373_s12 = smov 16  }
  0x13   :  { %37 = dma.hbm_to_vmem [thread:$0]  %s2636_s1, 1024, %s32_s25, [#allocation6], %s2372_s11, %s2372_s11, %s2373_s12  }
  0x14   :  { %s2374_s15 = smov [#allocation2]   ;;  %s2375_s17 = smov [#allocation7]  }
  0x15   :  { %s22_s16 = sshll.u32 %s2374_s15, 4  ;;  %s45_s18 = sshll.u32 %s2375_s17, 4  ;;  %s23_s16 = int_to_ptr.vmem [resolvable:$true] %s22_s16  ;;  %s46_s18 = int_to_ptr.vmem [resolvable:$true] %s45_s18 }
  0x16   :  { %s2275_s21 = scalar_lea.hbm %s2635_s0, 128 }
  0x17   :  { %p2276_p8 = scmp.ne.s32.totalorder %s2635_s0, %s2275_s21  ;;  %p2279_p9 = scmp.lt.u32.totalorder %s2275_s21, %s2635_s0 }
  0x19   :  { %p2281_p10 = pnand %p2279_p9, %p2276_p8 }
  0x1b   :  { %2284 = shalt.err (!%p2281_p10)
}
  0x1c   :  { %s2285_s1 = scalar_lea.vmem %s23_s16, 128  ;;  %p2290_p12 = scmp.lt.s32.totalorder %s23_s16, %s23_s16 }
  0x1d   :  { %p2286_p11 = scmp.ne.s32.totalorder %s23_s16, %s2285_s1  ;;  %p2291_p13 = scmp.lt.s32.totalorder %s2285_s1, %s2285_s1 }
  0x1f   :  { %p2292_p0 = por %p2291_p13, %p2290_p12 }
  0x21   :  { %p2293_p1 = pnand %p2292_p0, %p2286_p11 }
  0x23   :  { %2296 = shalt.err (!%p2293_p1)
}
  0x24   :  { %25 = dma.hbm_to_vmem [thread:$0]  %s2635_s0, 128, %s23_s16, [#allocation3]  }
  0x25   :  { %s2297_s30 = scalar_lea.hbm %s2638_s3, 16384 }
  0x26   :  { %p2298_p2 = scmp.ne.s32.totalorder %s2638_s3, %s2297_s30  ;;  %p2301_p3 = scmp.lt.u32.totalorder %s2297_s30, %s2638_s3 }
  0x28   :  { %p2303_p4 = pnand %p2301_p3, %p2298_p2 }
  0x2a   :  { %2306 = shalt.err (!%p2303_p4)
}
  0x2b   :  { %s2307_s14 = scalar_lea.vmem %s46_s18, 16384  ;;  %p2312_p6 = scmp.lt.s32.totalorder %s46_s18, %s46_s18 }
  0x2c   :  { %p2308_p5 = scmp.ne.s32.totalorder %s46_s18, %s2307_s14  ;;  %p2313_p7 = scmp.lt.s32.totalorder %s2307_s14, %s2307_s14 }
  0x2e   :  { %p2314_p8 = por %p2313_p7, %p2312_p6 }
  0x30   :  { %p2315_p9 = pnand %p2314_p8, %p2308_p5 }
  0x32   :  { %2318 = shalt.err (!%p2315_p9)
}
  0x33   :  { %51 = dma.hbm_to_vmem [thread:$0]  %s2638_s3, 16384, %s46_s18, [#allocation6], %s2372_s11, %s2372_s11, %s2373_s12  }
  0x34   :  { %s2376_s16 = smov [#allocation8]   ;;  %s2319_s21 = scalar_lea.hbm %s2640_s5, 4096 }
  0x35   :  { %s59_s17 = sshll.u32 %s2376_s16, 4  ;;  %p2320_p10 = scmp.ne.s32.totalorder %s2640_s5, %s2319_s21  ;;  %s60_s17 = int_to_ptr.vmem [resolvable:$true] %s59_s17 }
  0x36   :  { %p2323_p11 = scmp.lt.u32.totalorder %s2319_s21, %s2640_s5 }
  0x38   :  { %p2325_p12 = pnand %p2323_p11, %p2320_p10 }
  0x3a   :  { %2328 = shalt.err (!%p2325_p12)
}
  0x3b   :  { %s2329_s1 = scalar_lea.vmem %s60_s17, 4096  ;;  %p2334_p0 = scmp.lt.s32.totalorder %s60_s17, %s60_s17 }
  0x3c   :  { %p2330_p13 = scmp.ne.s32.totalorder %s60_s17, %s2329_s1  ;;  %p2335_p1 = scmp.lt.s32.totalorder %s2329_s1, %s2329_s1 }
  0x3e   :  { %p2336_p2 = por %p2335_p1, %p2334_p0 }
  0x40   :  { %p2337_p3 = pnand %p2336_p2, %p2330_p13 }
  0x42   :  { %2340 = shalt.err (!%p2337_p3)
}
  0x43   :  { %s2377_s3 = smov 64   ;;  %s2378_s11 = smov 4  }
  0x44   :  { %65 = dma.hbm_to_vmem [thread:$0]  %s2640_s5, 4096, %s60_s17, [#allocation9], %s2377_s3, %s2377_s3, %s2378_s11  }
  0x45   :  { %2363 = dma.done.wait [#allocation3], 128  }
  0x46   :  { %2364 = vsyncadd [#allocation3], 4294967168 }
  0x47   :  { %2365 = dma.done.wait [#allocation6], 17408  }
  0x48   :  { %2366 = vsyncadd [#allocation6], 4294949888 }
  0x49   :  { %2367 = dma.done.wait [#allocation9], 4096  }
  0x4a   :  { %2368 = vsyncadd [#allocation9], 4294963200  ;;  %v2379_v0 = vmov 0   ;;  %v2001_v1 = vld [vmem:[#allocation5 + $0x4] ss:$16 sps:$4 sm:$0xff]   ;;  %v81_v5 = vld [vmem:[#allocation2] sm:$0xff] }
  0x4b   :  { %189 = vmatprep.mubr.bf16.mxu0 %v2379_v0  ;;  %230 = vmatprep.mubr.bf16.mxu1 %v2379_v0  ;;  %v2003_v2 = vld [vmem:[#allocation5] ss:$16 sps:$4 sm:$0xff]   ;;  %v2004_v3 = vld [vmem:[#allocation5 + $0x24] ss:$16 sps:$4 sm:$0xff]   ;;  %v2007_v6 = vld [vmem:[#allocation5 + $0xc] ss:$16 sps:$4 sm:$0xff]   ;;  %v82_v9 = vpack.c.bf16 %v81_v5, %v81_v5 }
  0x4c   :  { %157 = vmatprep.subr.bf16.mxu0 %v2001_v1  ;;  %v2006_v4 = vld [vmem:[#allocation5 + $0x20] ss:$16 sps:$4 sm:$0xff]   ;;  %v2009_v7 = vld [vmem:[#allocation5 + $0x8] ss:$16 sps:$4 sm:$0xff]   ;;  %198 = vmatprep.subr.bf16.mxu1 %v2007_v6  ;;  %v2010_v8 = vld [vmem:[#allocation5 + $0x2c] ss:$16 sps:$4 sm:$0xff]  }
  0x4d   :  { %158 = vmatpush1.bf16.msra.mxu0 %v2003_v2  ;;  %199 = vmatpush1.bf16.msra.mxu1 %v2009_v7  ;;  %v2012_v10 = vld [vmem:[#allocation5 + $0x28] ss:$16 sps:$4 sm:$0xff]   ;;  %v2015_v11 = vld [vmem:[#allocation7 + $0x4] ss:$16 sps:$4 sm:$0xff]   ;;  %vm153_vm0 = vcmask 261120   ;;  %s2380_s29 = smov 65  }
  0x4e   :  { %159 = vmatprep.subr.bf16.mxu0 %v2004_v3  ;;  %200 = vmatprep.subr.bf16.mxu1 %v2010_v8  ;;  %v2013_v12 = vld [vmem:[#allocation7] ss:$16 sps:$4 sm:$0xff]   ;;  %v2018_v13 = vld [vmem:[#allocation7 + $0xc] ss:$16 sps:$4 sm:$0xff]   ;;  %v2021_v14 = vld [vmem:[#allocation7 + $0x24] ss:$16 sps:$4 sm:$0xff]  }
  0x4f   :  { %v2016_v15 = vld [vmem:[#allocation7 + $0x8] ss:$16 sps:$4 sm:$0xff]   ;;  %v2019_v16 = vld [vmem:[#allocation7 + $0x20] ss:$16 sps:$4 sm:$0xff]   ;;  %v2024_v17 = vld [vmem:[#allocation7 + $0x2c] ss:$16 sps:$4 sm:$0xff]  }
  0x50   :  { %v2027_v18 = vld [vmem:[#allocation7 + $0x44] ss:$16 sps:$4 sm:$0xff]   ;;  %v2022_v19 = vld [vmem:[#allocation7 + $0x28] ss:$16 sps:$4 sm:$0xff]   ;;  %v2025_v20 = vld [vmem:[#allocation7 + $0x40] ss:$16 sps:$4 sm:$0xff]  }
  0x51   :  { %160 = vmatpush1.bf16.msra.mxu0 %v2006_v4  ;;  %201 = vmatpush1.bf16.msra.mxu1 %v2012_v10  ;;  %v2030_v21 = vld [vmem:[#allocation7 + $0x4c] ss:$16 sps:$4 sm:$0xff]   ;;  %v2033_v22 = vld [vmem:[#allocation7 + $0x64] ss:$16 sps:$4 sm:$0xff]   ;;  %v2028_v23 = vld [vmem:[#allocation7 + $0x48] ss:$16 sps:$4 sm:$0xff]  }
  0x52   :  { %1045 = vmatprep.subr.bf16.mxu0 %v2015_v11  ;;  %1127 = vmatprep.subr.bf16.mxu1 %v2018_v13  ;;  %v2031_v24 = vld [vmem:[#allocation7 + $0x60] ss:$16 sps:$4 sm:$0xff]   ;;  %v2036_v25 = vld [vmem:[#allocation7 + $0x6c] ss:$16 sps:$4 sm:$0xff]   ;;  %v2039_v26 = vld [vmem:[#allocation7 + $0x84] ss:$16 sps:$4 sm:$0xff]   ;;  %v93_v13 = vlaneseq }
  0x53   :  { %v2034_v27 = vld [vmem:[#allocation7 + $0x68] ss:$16 sps:$4 sm:$0xff]   ;;  %v2037_v28 = vld [vmem:[#allocation7 + $0x80] ss:$16 sps:$4 sm:$0xff]   ;;  %v2042_v29 = vld [vmem:[#allocation7 + $0x8c] ss:$16 sps:$4 sm:$0xff]  }
  0x54   :  { %1762 = vmatmul.mubr.msk.bf16.vlgmr.msra.gmra.mrb[0].mxu0 %vm153_vm0, %v82_v9  ;;  %1763 = vmatmul.mubr.msk.bf16.vlgmr.msra.gmra.mrb[0].mxu1 %vm153_vm0, %v82_v9  ;;  %v2045_v30 = vld [vmem:[#allocation7 + $0xa4] ss:$16 sps:$4 sm:$0xff]   ;;  %v2040_v31 = vld [vmem:[#allocation7 + $0x88] ss:$16 sps:$4 sm:$0xff]   ;;  %v2043_v32 = vld [vmem:[#allocation7 + $0xa0] ss:$16 sps:$4 sm:$0xff]  }
  0x55   :  { %1046 = vmatpush1.bf16.msra.mxu0 %v2013_v12  ;;  %1128 = vmatpush1.bf16.msra.mxu1 %v2016_v15  ;;  %v2048_v33 = vld [vmem:[#allocation7 + $0xac] ss:$16 sps:$4 sm:$0xff]   ;;  %v2051_v34 = vld [vmem:[#allocation7 + $0xc4] ss:$16 sps:$4 sm:$0xff]   ;;  %v2046_v35 = vld [vmem:[#allocation7 + $0xa8] ss:$16 sps:$4 sm:$0xff]  }
  0x56   :  { %1047 = vmatprep.subr.bf16.mxu0 %v2021_v14  ;;  %1129 = vmatprep.subr.bf16.mxu1 %v2024_v17  ;;  %v2049_v36 = vld [vmem:[#allocation7 + $0xc0] ss:$16 sps:$4 sm:$0xff]   ;;  %v2054_v37 = vld [vmem:[#allocation7 + $0xcc] ss:$16 sps:$4 sm:$0xff]   ;;  %v2057_v38 = vld [vmem:[#allocation7 + $0xe4] ss:$16 sps:$4 sm:$0xff]  }
  0x57   :  { %v2052_v39 = vld [vmem:[#allocation7 + $0xc8] ss:$16 sps:$4 sm:$0xff]   ;;  %v2055_v40 = vld [vmem:[#allocation7 + $0xe0] ss:$16 sps:$4 sm:$0xff]   ;;  %v2060_v41 = vld [vmem:[#allocation7 + $0xec] ss:$16 sps:$4 sm:$0xff]  }
  0x58   :  { %v2063_v42 = vld [vmem:[#allocation7 + $0x104] ss:$16 sps:$4 sm:$0xff]   ;;  %v2058_v43 = vld [vmem:[#allocation7 + $0xe8] ss:$16 sps:$4 sm:$0xff]   ;;  %v2061_v44 = vld [vmem:[#allocation7 + $0x100] ss:$16 sps:$4 sm:$0xff]  }
  0x59   :  { %1048 = vmatpush1.bf16.msra.mxu0 %v2019_v16  ;;  %1130 = vmatpush1.bf16.msra.mxu1 %v2022_v19  ;;  %v2066_v45 = vld [vmem:[#allocation7 + $0x10c] ss:$16 sps:$4 sm:$0xff]   ;;  %v2069_v46 = vld [vmem:[#allocation7 + $0x124] ss:$16 sps:$4 sm:$0xff]   ;;  %v2064_v47 = vld [vmem:[#allocation7 + $0x108] ss:$16 sps:$4 sm:$0xff]  }
  0x5a   :  { %1049 = vmatprep.subr.bf16.mxu0 %v2027_v18  ;;  %1131 = vmatprep.subr.bf16.mxu1 %v2030_v21  ;;  %v2067_v48 = vld [vmem:[#allocation7 + $0x120] ss:$16 sps:$4 sm:$0xff]   ;;  %v2072_v49 = vld [vmem:[#allocation7 + $0x12c] ss:$16 sps:$4 sm:$0xff]   ;;  %v2075_v50 = vld [vmem:[#allocation7 + $0x144] ss:$16 sps:$4 sm:$0xff]  }
  0x5b   :  { %v2070_v51 = vld [vmem:[#allocation7 + $0x128] ss:$16 sps:$4 sm:$0xff]   ;;  %v2073_v52 = vld [vmem:[#allocation7 + $0x140] ss:$16 sps:$4 sm:$0xff]   ;;  %v2078_v53 = vld [vmem:[#allocation7 + $0x14c] ss:$16 sps:$4 sm:$0xff]  }
  0x5c   :  { %v2081_v54 = vld [vmem:[#allocation7 + $0x164] ss:$16 sps:$4 sm:$0xff]   ;;  %v2076_v55 = vld [vmem:[#allocation7 + $0x148] ss:$16 sps:$4 sm:$0xff]   ;;  %v2079_v56 = vld [vmem:[#allocation7 + $0x160] ss:$16 sps:$4 sm:$0xff]  }
  0x5d   :  { %1050 = vmatpush1.bf16.msra.mxu0 %v2025_v20  ;;  %1132 = vmatpush1.bf16.msra.mxu1 %v2028_v23  ;;  %v2084_v57 = vld [vmem:[#allocation7 + $0x16c] ss:$16 sps:$4 sm:$0xff]   ;;  %v2087_v58 = vld [vmem:[#allocation7 + $0x184] ss:$16 sps:$4 sm:$0xff]   ;;  %v2082_v59 = vld [vmem:[#allocation7 + $0x168] ss:$16 sps:$4 sm:$0xff]  }
  0x5e   :  { %1051 = vmatprep.subr.bf16.mxu0 %v2033_v22  ;;  %1133 = vmatprep.subr.bf16.mxu1 %v2036_v25  ;;  %v2085_v60 = vld [vmem:[#allocation7 + $0x180] ss:$16 sps:$4 sm:$0xff]   ;;  %v2090_v61 = vld [vmem:[#allocation7 + $0x18c] ss:$16 sps:$4 sm:$0xff]   ;;  %v2093_v62 = vld [vmem:[#allocation7 + $0x1a4] ss:$16 sps:$4 sm:$0xff]  }
  0x5f   :  { %v2088_v63 = vld [vmem:[#allocation7 + $0x188] ss:$16 sps:$4 sm:$0xff]   ;;  %v2091_v0 = vld [vmem:[#allocation7 + $0x1a0] ss:$16 sps:$4 sm:$0xff]   ;;  %v2096_v1 = vld [vmem:[#allocation7 + $0x1ac] ss:$16 sps:$4 sm:$0xff]  }
  0x60   :  { %v2094_v2 = vld [vmem:[#allocation7 + $0x1a8] ss:$16 sps:$4 sm:$0xff]   ;;  %v2099_v3 = vld [vmem:[#allocation7 + $0x1c4] ss:$16 sps:$4 sm:$0xff]   ;;  %v2102_v4 = vld [vmem:[#allocation7 + $0x1cc] ss:$16 sps:$4 sm:$0xff]  }
  0x61   :  { %1052 = vmatpush1.bf16.msra.mxu0 %v2031_v24  ;;  %1134 = vmatpush1.bf16.msra.mxu1 %v2034_v27  ;;  %v2097_v5 = vld [vmem:[#allocation7 + $0x1c0] ss:$16 sps:$4 sm:$0xff]   ;;  %v2100_v6 = vld [vmem:[#allocation7 + $0x1c8] ss:$16 sps:$4 sm:$0xff]   ;;  %v2105_v7 = vld [vmem:[#allocation7 + $0x1e4] ss:$16 sps:$4 sm:$0xff]  }
  0x62   :  { %1053 = vmatprep.subr.bf16.mxu0 %v2039_v26  ;;  %1135 = vmatprep.subr.bf16.mxu1 %v2042_v29  ;;  %v2108_v8 = vld [vmem:[#allocation7 + $0x1ec] ss:$16 sps:$4 sm:$0xff]   ;;  %v2103_v9 = vld [vmem:[#allocation7 + $0x1e0] ss:$16 sps:$4 sm:$0xff]   ;;  %v2106_v10 = vld [vmem:[#allocation7 + $0x1e8] ss:$16 sps:$4 sm:$0xff]  }
  0x63   :  { %v2111_v11 = vld [vmem:[#allocation7 + $0x204] ss:$16 sps:$4 sm:$0xff]   ;;  %v2114_v12 = vld [vmem:[#allocation7 + $0x20c] ss:$16 sps:$4 sm:$0xff]   ;;  %v2482_v14 = vshrl.u32 %v93_v13, 7  ;;  %s2381_s30 = smov 107  }
  0x64   :  { %v2488_v16 = vld [vmem:[%s2637_s2] sm:$0xf]  ;;  %v2168_v13 = vld [vmem:[#allocation7 + $0x32c] ss:$16 sps:$4 sm:$0xff]   ;;  %s2382_s8 = smov 44   ;;  %s2383_s9 = smov 86  }
  0x65   :  { %1054 = vmatpush1.bf16.msra.mxu0 %v2037_v28  ;;  %1136 = vmatpush1.bf16.msra.mxu1 %v2040_v31  ;;  %v95_v15 = vsub.s32 0, %v2482_v14  ;;  %v99_v17 = vsub.s32 1, %v2482_v14  ;;  %v107_v19 = vsub.s32 3, %v2482_v14  ;;  %s2384_s10 = smov 23   ;;  %vm2385_vm11 = vmmov 1  }
  0x66   :  { %1055 = vmatprep.subr.bf16.mxu0 %v2045_v30  ;;  %1137 = vmatprep.subr.bf16.mxu1 %v2048_v33 }
  0x67   :  { %v96_v18 = vrot.slane %v2488_v16, %v95_v15  ;;  %v100_v20 = vrot.slane %v2488_v16, %v99_v17  ;;  %v108_v24 = vrot.slane %v2488_v16, %v107_v19 }
  0x69   :  { %1056 = vmatpush1.bf16.msra.mxu0 %v2043_v32  ;;  %1138 = vmatpush1.bf16.msra.mxu1 %v2046_v35 }
  0x6a   :  { %1057 = vmatprep.subr.bf16.mxu0 %v2051_v34  ;;  %1139 = vmatprep.subr.bf16.mxu1 %v2054_v37 }
  0x6d   :  { %1058 = vmatpush1.bf16.msra.mxu0 %v2049_v36  ;;  %1140 = vmatpush1.bf16.msra.mxu1 %v2052_v39  ;;  %v2109_v36 = vld [vmem:[#allocation7 + $0x200] ss:$16 sps:$4 sm:$0xff]   ;;  %v2112_v39 = vld [vmem:[#allocation7 + $0x208] ss:$16 sps:$4 sm:$0xff]  }
  0x6e   :  { %1059 = vmatprep.subr.bf16.mxu0 %v2057_v38  ;;  %1141 = vmatprep.subr.bf16.mxu1 %v2060_v41 }
  0x71   :  { %1060 = vmatpush1.bf16.msra.mxu0 %v2055_v40  ;;  %1142 = vmatpush1.bf16.msra.mxu1 %v2058_v43  ;;  %v2120_v43 = vld [vmem:[#allocation7 + $0x22c] ss:$16 sps:$4 sm:$0xff]  }
  0x72   :  { %1061 = vmatprep.subr.bf16.mxu0 %v2063_v42  ;;  %1143 = vmatprep.subr.bf16.mxu1 %v2066_v45  ;;  %v2117_v42 = vld [vmem:[#allocation7 + $0x224] ss:$16 sps:$4 sm:$0xff]  }
  0x75   :  { %1062 = vmatpush1.bf16.msra.mxu0 %v2061_v44  ;;  %1144 = vmatpush1.bf16.msra.mxu1 %v2064_v47  ;;  %v2118_v47 = vld [vmem:[#allocation7 + $0x228] ss:$16 sps:$4 sm:$0xff]  }
  0x76   :  { %1063 = vmatprep.subr.bf16.mxu0 %v2069_v46  ;;  %1145 = vmatprep.subr.bf16.mxu1 %v2072_v49  ;;  %v2115_v46 = vld [vmem:[#allocation7 + $0x220] ss:$16 sps:$4 sm:$0xff]   ;;  %v2126_v49 = vld [vmem:[#allocation7 + $0x24c] ss:$16 sps:$4 sm:$0xff]  }
  0x79   :  { %1064 = vmatpush1.bf16.msra.mxu0 %v2067_v48  ;;  %1146 = vmatpush1.bf16.msra.mxu1 %v2070_v51  ;;  %v2123_v48 = vld [vmem:[#allocation7 + $0x244] ss:$16 sps:$4 sm:$0xff]   ;;  %v2124_v51 = vld [vmem:[#allocation7 + $0x248] ss:$16 sps:$4 sm:$0xff]  }
  0x7a   :  { %1065 = vmatprep.subr.bf16.mxu0 %v2075_v50  ;;  %1147 = vmatprep.subr.bf16.mxu1 %v2078_v53  ;;  %v2121_v50 = vld [vmem:[#allocation7 + $0x240] ss:$16 sps:$4 sm:$0xff]   ;;  %v2132_v53 = vld [vmem:[#allocation7 + $0x26c] ss:$16 sps:$4 sm:$0xff]  }
  0x7d   :  { %1066 = vmatpush1.bf16.msra.mxu0 %v2073_v52  ;;  %1148 = vmatpush1.bf16.msra.mxu1 %v2076_v55  ;;  %v2129_v52 = vld [vmem:[#allocation7 + $0x264] ss:$16 sps:$4 sm:$0xff]   ;;  %v2130_v55 = vld [vmem:[#allocation7 + $0x268] ss:$16 sps:$4 sm:$0xff]  }
  0x7e   :  { %1067 = vmatprep.subr.bf16.mxu0 %v2081_v54  ;;  %1149 = vmatprep.subr.bf16.mxu1 %v2084_v57  ;;  %v2127_v54 = vld [vmem:[#allocation7 + $0x260] ss:$16 sps:$4 sm:$0xff]   ;;  %v2138_v57 = vld [vmem:[#allocation7 + $0x28c] ss:$16 sps:$4 sm:$0xff]  }
  0x81   :  { %1068 = vmatpush1.bf16.msra.mxu0 %v2079_v56  ;;  %1150 = vmatpush1.bf16.msra.mxu1 %v2082_v59  ;;  %v2135_v56 = vld [vmem:[#allocation7 + $0x284] ss:$16 sps:$4 sm:$0xff]   ;;  %v2136_v59 = vld [vmem:[#allocation7 + $0x288] ss:$16 sps:$4 sm:$0xff]  }
  0x82   :  { %1069 = vmatprep.subr.bf16.mxu0 %v2087_v58  ;;  %1151 = vmatprep.subr.bf16.mxu1 %v2090_v61  ;;  %v2133_v58 = vld [vmem:[#allocation7 + $0x280] ss:$16 sps:$4 sm:$0xff]   ;;  %v2144_v61 = vld [vmem:[#allocation7 + $0x2ac] ss:$16 sps:$4 sm:$0xff]  }
  0x85   :  { %1070 = vmatpush1.bf16.msra.mxu0 %v2085_v60  ;;  %1152 = vmatpush1.bf16.msra.mxu1 %v2088_v63  ;;  %v2141_v60 = vld [vmem:[#allocation7 + $0x2a4] ss:$16 sps:$4 sm:$0xff]   ;;  %v2142_v63 = vld [vmem:[#allocation7 + $0x2a8] ss:$16 sps:$4 sm:$0xff]  }
  0x86   :  { %1071 = vmatprep.subr.bf16.mxu0 %v2093_v62  ;;  %1153 = vmatprep.subr.bf16.mxu1 %v2096_v1  ;;  %v2139_v62 = vld [vmem:[#allocation7 + $0x2a0] ss:$16 sps:$4 sm:$0xff]   ;;  %v2150_v1 = vld [vmem:[#allocation7 + $0x2cc] ss:$16 sps:$4 sm:$0xff]  }
  0x89   :  { %1072 = vmatpush1.bf16.msra.mxu0 %v2091_v0  ;;  %1154 = vmatpush1.bf16.msra.mxu1 %v2094_v2  ;;  %v2147_v0 = vld [vmem:[#allocation7 + $0x2c4] ss:$16 sps:$4 sm:$0xff]   ;;  %v2145_v2 = vld [vmem:[#allocation7 + $0x2c0] ss:$16 sps:$4 sm:$0xff]  }
  0x8a   :  { %1073 = vmatprep.subr.bf16.mxu0 %v2099_v3  ;;  %1155 = vmatprep.subr.bf16.mxu1 %v2102_v4  ;;  %v2148_v3 = vld [vmem:[#allocation7 + $0x2c8] ss:$16 sps:$4 sm:$0xff]   ;;  %v2153_v4 = vld [vmem:[#allocation7 + $0x2e4] ss:$16 sps:$4 sm:$0xff]  }
  0x8d   :  { %1074 = vmatpush1.bf16.msra.mxu0 %v2097_v5  ;;  %1156 = vmatpush1.bf16.msra.mxu1 %v2100_v6  ;;  %v2156_v5 = vld [vmem:[#allocation7 + $0x2ec] ss:$16 sps:$4 sm:$0xff]   ;;  %v2151_v6 = vld [vmem:[#allocation7 + $0x2e0] ss:$16 sps:$4 sm:$0xff]  }
  0x8e   :  { %1075 = vmatprep.subr.bf16.mxu0 %v2105_v7  ;;  %1157 = vmatprep.subr.bf16.mxu1 %v2108_v8  ;;  %v2154_v7 = vld [vmem:[#allocation7 + $0x2e8] ss:$16 sps:$4 sm:$0xff]   ;;  %v2159_v8 = vld [vmem:[#allocation7 + $0x304] ss:$16 sps:$4 sm:$0xff]  }
  0x91   :  { %1076 = vmatpush1.bf16.msra.mxu0 %v2103_v9  ;;  %1158 = vmatpush1.bf16.msra.mxu1 %v2106_v10  ;;  %v2162_v9 = vld [vmem:[#allocation7 + $0x30c] ss:$16 sps:$4 sm:$0xff]   ;;  %v2157_v10 = vld [vmem:[#allocation7 + $0x300] ss:$16 sps:$4 sm:$0xff]  }
  0x92   :  { %1086 = vmatprep.subr.bf16.mxu0 %v2111_v11  ;;  %1168 = vmatprep.subr.bf16.mxu1 %v2114_v12  ;;  %v2160_v11 = vld [vmem:[#allocation7 + $0x308] ss:$16 sps:$4 sm:$0xff]   ;;  %v2165_v12 = vld [vmem:[#allocation7 + $0x324] ss:$16 sps:$4 sm:$0xff]  }
 0x127   :  { %v191_v21 = vpop.f32.mrb[0].mxu0  ;;  %v2501_v29 = vpop.f32.mrb[0].mxu1 }
 0x128   :  { %v192_v22 = vadd.f32 %v191_v21, %v96_v18  ;;  %v193_v23 = vpop.f32.mrb[1].mxu0  ;;  %v234_v31 = vpop.f32.mrb[1].mxu1  ;;  %v2163_v18 = vld [vmem:[#allocation7 + $0x320] ss:$16 sps:$4 sm:$0xff]   ;;  %v2171_v21 = vld [vmem:[#allocation7 + $0x344] ss:$16 sps:$4 sm:$0xff]  }
 0x129   :  { %v194_v25 = vadd.f32 %v193_v23, %v100_v20  ;;  %v195_v26 = vpop.f32.mrb[2].mxu0  ;;  %v235_v33 = vadd.f32 %v234_v31, %v108_v24  ;;  %v236_v34 = vpop.f32.mrb[2].mxu1  ;;  %v2166_v20 = vld [vmem:[#allocation7 + $0x328] ss:$16 sps:$4 sm:$0xff]   ;;  %v2169_v23 = vld [vmem:[#allocation7 + $0x340] ss:$16 sps:$4 sm:$0xff]  }
 0x12a   :  { %vm239_vm1 = vcmp.ge.f32.partialorder %v192_v22, 0.0  ;;  %v243_v27 = vmul.f32 0.2, %v192_v22  ;;  %v196_v28 = vpop.f32.mrb[3].mxu0  ;;  %v237_v37 = vpop.f32.mrb[3].mxu1 }
 0x12b   :  { %vm240_vm2 = vcmp.ge.f32.partialorder %v194_v25, 0.0  ;;  %v244_v30 = vmul.f32 0.2, %v194_v25  ;;  %vm242_vm3 = vcmp.ge.f32.partialorder %v235_v33, 0.0  ;;  %v246_v40 = vmul.f32 0.2, %v235_v33 }
 0x12c   :  { %v247_v32 = vsel %vm239_vm1, %v192_v22, %v243_v27  ;;  %v2174_v22 = vld [vmem:[#allocation7 + $0x34c] ss:$16 sps:$4 sm:$0xff]   ;;  %v2172_v24 = vld [vmem:[#allocation7 + $0x348] ss:$16 sps:$4 sm:$0xff]   ;;  %v2175_v27 = vld [vmem:[#allocation7 + $0x360] ss:$16 sps:$4 sm:$0xff]  }
 0x12d   :  { %v248_v35 = vsel %vm240_vm2, %v194_v25, %v244_v30  ;;  %v251_v41 = vpack.c.bf16 %v247_v32, %v247_v32  ;;  %v250_v44 = vsel %vm242_vm3, %v235_v33, %v246_v40  ;;  %v2177_v25 = vld [vmem:[#allocation7 + $0x364] ss:$16 sps:$4 sm:$0xff]   ;;  %v2180_v26 = vld [vmem:[#allocation7 + $0x36c] ss:$16 sps:$4 sm:$0xff]   ;;  %v2178_v28 = vld [vmem:[#allocation7 + $0x368] ss:$16 sps:$4 sm:$0xff]  }
 0x12e   :  { %v252_v38 = vpack.c.bf16 %v248_v35, %v248_v35  ;;  %v254_v45 = vpack.c.bf16 %v250_v44, %v250_v44  ;;  %v2183_v30 = vld [vmem:[#allocation7 + $0x384] ss:$16 sps:$4 sm:$0xff]   ;;  %v2186_v31 = vld [vmem:[#allocation7 + $0x38c] ss:$16 sps:$4 sm:$0xff]   ;;  %v103_v32 = vsub.s32 2, %v2482_v14 }
 0x12f   :  { %v2181_v33 = vld [vmem:[#allocation7 + $0x380] ss:$16 sps:$4 sm:$0xff]   ;;  %v2184_v34 = vld [vmem:[#allocation7 + $0x388] ss:$16 sps:$4 sm:$0xff]   ;;  %v2189_v35 = vld [vmem:[#allocation7 + $0x3a4] ss:$16 sps:$4 sm:$0xff]  }
 0x130   :  { %1077 = vmatprep.mubr.bf16.mxu0 %v252_v38  ;;  %1159 = vmatprep.mubr.bf16.mxu1 %v252_v38  ;;  %v104_v37 = vrot.slane %v2488_v16, %v103_v32  ;;  %v2187_v38 = vld [vmem:[#allocation7 + $0x3a0] ss:$16 sps:$4 sm:$0xff]   ;;  %v2195_v40 = vld [vmem:[#allocation7 + $0x3c4] ss:$16 sps:$4 sm:$0xff]   ;;  %v2196_v44 = vld [vmem:[#allocation7 + $0x3c8] ss:$16 sps:$4 sm:$0xff]  }
 0x131   :  { %1078 = vmatmul.mubr.bf16.vlgmr.msra.gmra.mrb[4].mxu0 %v251_v41  ;;  %1160 = vmatmul.mubr.bf16.vlgmr.msra.gmra.mrb[4].mxu1 %v251_v41  ;;  %v2198_v41 = vld [vmem:[#allocation7 + $0x3cc] ss:$16 sps:$4 sm:$0xff]   ;;  %v2199_v16 = vld [vmem:[#allocation7 + $0x3e0] ss:$16 sps:$4 sm:$0xff]  }
 0x132   :  { %1087 = vmatpush1.bf16.msra.mxu0 %v2109_v36  ;;  %1169 = vmatpush1.bf16.msra.mxu1 %v2112_v39  ;;  %v2192_v36 = vld [vmem:[#allocation7 + $0x3ac] ss:$16 sps:$4 sm:$0xff]   ;;  %v2190_v39 = vld [vmem:[#allocation7 + $0x3a8] ss:$16 sps:$4 sm:$0xff]  }
 0x133   :  { %1088 = vmatprep.subr.bf16.mxu0 %v2117_v42  ;;  %1170 = vmatprep.subr.bf16.mxu1 %v2120_v43  ;;  %v233_v42 = vadd.f32 %v2501_v29, %v104_v37  ;;  %v2193_v43 = vld [vmem:[#allocation7 + $0x3c0] ss:$16 sps:$4 sm:$0xff]  }
 0x134   :  { %1118 = vmatprep.mubr.bf16.mxu0 %v254_v45  ;;  %1200 = vmatprep.mubr.bf16.mxu1 %v254_v45  ;;  %v2201_v45 = vld [vmem:[#allocation7 + $0x3e4] ss:$16 sps:$4 sm:$0xff]  }
 0x135   :  { %vm241_vm4 = vcmp.ge.f32.partialorder %v233_v42, 0.0  ;;  %v2207_v29 = vld [vmem:[#allocation8] sm:$0xff]  }
 0x136   :  { %1089 = vmatpush1.bf16.msra.mxu0 %v2115_v46  ;;  %1171 = vmatpush1.bf16.msra.mxu1 %v2118_v47  ;;  %v2204_v46 = vld [vmem:[#allocation7 + $0x3ec] ss:$16 sps:$4 sm:$0xff]   ;;  %v245_v47 = vmul.f32 0.2, %v233_v42 }
 0x137   :  { %1090 = vmatprep.subr.bf16.mxu0 %v2123_v48  ;;  %1172 = vmatprep.subr.bf16.mxu1 %v2126_v49  ;;  %v2202_v48 = vld [vmem:[#allocation7 + $0x3e8] ss:$16 sps:$4 sm:$0xff]   ;;  %v2205_v49 = vld [vmem:[#allocation8 + $0x40] sm:$0xff]  }
 0x13a   :  { %1091 = vmatpush1.bf16.msra.mxu0 %v2121_v50  ;;  %1173 = vmatpush1.bf16.msra.mxu1 %v2124_v51  ;;  %v2206_v50 = vld [vmem:[#allocation8 + $0xc0] sm:$0xff]   ;;  %v249_v51 = vsel %vm241_vm4, %v233_v42, %v245_v47 }
 0x13b   :  { %1092 = vmatprep.subr.bf16.mxu0 %v2129_v52  ;;  %1174 = vmatprep.subr.bf16.mxu1 %v2132_v53  ;;  %v2208_v52 = vld [vmem:[#allocation8 + $0x80] sm:$0xff]   ;;  %v253_v53 = vpack.c.bf16 %v249_v51, %v249_v51 }
 0x13e   :  { %1093 = vmatpush1.bf16.msra.mxu0 %v2127_v54  ;;  %1175 = vmatpush1.bf16.msra.mxu1 %v2130_v55  ;;  %v2209_v54 = vld [vmem:[#allocation8 + $0x48] sm:$0xff]  }
 0x13f   :  { %1094 = vmatprep.subr.bf16.mxu0 %v2135_v56  ;;  %1176 = vmatprep.subr.bf16.mxu1 %v2138_v57  ;;  %v2210_v55 = vld [vmem:[#allocation8 + $0xc8] sm:$0xff]  }
 0x140   :  { %v2211_v56 = vld [vmem:[#allocation8 + $0x8] sm:$0xff]  }
 0x141   :  { %v2212_v57 = vld [vmem:[#allocation8 + $0x88] sm:$0xff]  }
 0x142   :  { %1095 = vmatpush1.bf16.msra.mxu0 %v2133_v58  ;;  %1177 = vmatpush1.bf16.msra.mxu1 %v2136_v59  ;;  %v2213_v58 = vld [vmem:[#allocation8 + $0x50] sm:$0xff]  }
 0x143   :  { %1096 = vmatprep.subr.bf16.mxu0 %v2141_v60  ;;  %1178 = vmatprep.subr.bf16.mxu1 %v2144_v61  ;;  %v2214_v59 = vld [vmem:[#allocation8 + $0xd0] sm:$0xff]  }
 0x144   :  { %v2215_v60 = vld [vmem:[#allocation8 + $0x10] sm:$0xff]  }
 0x145   :  { %v2216_v61 = vld [vmem:[#allocation8 + $0x90] sm:$0xff]  }
 0x146   :  { %1097 = vmatpush1.bf16.msra.mxu0 %v2139_v62  ;;  %1179 = vmatpush1.bf16.msra.mxu1 %v2142_v63  ;;  %v2217_v62 = vld [vmem:[#allocation8 + $0x58] sm:$0xff]  }
 0x147   :  { %1098 = vmatprep.subr.bf16.mxu0 %v2147_v0  ;;  %1180 = vmatprep.subr.bf16.mxu1 %v2150_v1  ;;  %v2218_v63 = vld [vmem:[#allocation8 + $0xd8] sm:$0xff]  }
 0x148   :  { %v2219_v0 = vld [vmem:[#allocation8 + $0x18] sm:$0xff]  }
 0x149   :  { %v2220_v1 = vld [vmem:[#allocation8 + $0x98] sm:$0xff]  }
 0x14a   :  { %1099 = vmatpush1.bf16.msra.mxu0 %v2145_v2  ;;  %1181 = vmatpush1.bf16.msra.mxu1 %v2148_v3  ;;  %v2221_v2 = vld [vmem:[#allocation8 + $0x60] sm:$0xff]  }
 0x14b   :  { %1100 = vmatprep.subr.bf16.mxu0 %v2153_v4  ;;  %1182 = vmatprep.subr.bf16.mxu1 %v2156_v5  ;;  %v2222_v3 = vld [vmem:[#allocation8 + $0xe0] sm:$0xff]  }
 0x14c   :  { %v2223_v4 = vld [vmem:[#allocation8 + $0x20] sm:$0xff]  }
 0x14d   :  { %v2224_v5 = vld [vmem:[#allocation8 + $0xa0] sm:$0xff]  }
 0x14e   :  { %1101 = vmatpush1.bf16.msra.mxu0 %v2151_v6  ;;  %1183 = vmatpush1.bf16.msra.mxu1 %v2154_v7  ;;  %v2225_v6 = vld [vmem:[#allocation8 + $0x68] sm:$0xff]  }
 0x14f   :  { %1102 = vmatprep.subr.bf16.mxu0 %v2159_v8  ;;  %1184 = vmatprep.subr.bf16.mxu1 %v2162_v9  ;;  %v2226_v7 = vld [vmem:[#allocation8 + $0xe8] sm:$0xff]  }
 0x150   :  { %v2227_v8 = vld [vmem:[#allocation8 + $0x28] sm:$0xff]  }
 0x151   :  { %v2228_v9 = vld [vmem:[#allocation8 + $0xa8] sm:$0xff]  }
 0x152   :  { %1103 = vmatpush1.bf16.msra.mxu0 %v2157_v10  ;;  %1185 = vmatpush1.bf16.msra.mxu1 %v2160_v11  ;;  %v2229_v10 = vld [vmem:[#allocation8 + $0x70] sm:$0xff]  }
 0x153   :  { %1104 = vmatprep.subr.bf16.mxu0 %v2165_v12  ;;  %1186 = vmatprep.subr.bf16.mxu1 %v2168_v13  ;;  %v2230_v11 = vld [vmem:[#allocation8 + $0xf0] sm:$0xff]  }
 0x154   :  { %v2231_v12 = vld [vmem:[#allocation8 + $0x30] sm:$0xff]  }
 0x155   :  { %v2232_v13 = vld [vmem:[#allocation8 + $0xb0] sm:$0xff]  }
 0x156   :  { %1105 = vmatpush1.bf16.msra.mxu0 %v2163_v18  ;;  %1187 = vmatpush1.bf16.msra.mxu1 %v2166_v20  ;;  %v2233_v18 = vld [vmem:[#allocation8 + $0x78] sm:$0xff]  }
 0x157   :  { %1106 = vmatprep.subr.bf16.mxu0 %v2171_v21  ;;  %1188 = vmatprep.subr.bf16.mxu1 %v2174_v22  ;;  %v2234_v20 = vld [vmem:[#allocation8 + $0xf8] sm:$0xff]  }
 0x158   :  { %v2235_v21 = vld [vmem:[#allocation8 + $0x38] sm:$0xff]  }
 0x159   :  { %v2236_v22 = vld [vmem:[#allocation8 + $0xb8] sm:$0xff]  }
 0x15a   :  { %1107 = vmatpush1.bf16.msra.mxu0 %v2169_v23  ;;  %1189 = vmatpush1.bf16.msra.mxu1 %v2172_v24  ;;  %v383_v23 = vld [vmem:[%s2639_s4] sm:$0xf] }
 0x15b   :  { %1108 = vmatprep.subr.bf16.mxu0 %v2177_v25  ;;  %1190 = vmatprep.subr.bf16.mxu1 %v2180_v26  ;;  %v388_v24 = vrot.slane %v383_v23, %v95_v15  ;;  %v396_v25 = vrot.slane %v383_v23, %v103_v32  ;;  %v392_v26 = vrot.slane %v383_v23, %v99_v17 }
 0x15e   :  { %1109 = vmatpush1.bf16.msra.mxu0 %v2175_v27  ;;  %1191 = vmatpush1.bf16.msra.mxu1 %v2178_v28  ;;  %v400_v27 = vrot.slane %v383_v23, %v107_v19 }
 0x15f   :  { %1110 = vmatprep.subr.bf16.mxu0 %v2183_v30  ;;  %1192 = vmatprep.subr.bf16.mxu1 %v2186_v31 }
 0x162   :  { %1111 = vmatpush1.bf16.msra.mxu0 %v2181_v33  ;;  %1193 = vmatpush1.bf16.msra.mxu1 %v2184_v34 }
 0x163   :  { %1112 = vmatprep.subr.bf16.mxu0 %v2189_v35  ;;  %1194 = vmatprep.subr.bf16.mxu1 %v2192_v36 }
 0x166   :  { %1113 = vmatpush1.bf16.msra.mxu0 %v2187_v38  ;;  %1195 = vmatpush1.bf16.msra.mxu1 %v2190_v39 }
 0x167   :  { %1114 = vmatprep.subr.bf16.mxu0 %v2195_v40  ;;  %1196 = vmatprep.subr.bf16.mxu1 %v2198_v41 }
 0x16a   :  { %1115 = vmatpush1.bf16.msra.mxu0 %v2193_v43  ;;  %1197 = vmatpush1.bf16.msra.mxu1 %v2196_v44 }
 0x16b   :  { %1116 = vmatprep.subr.bf16.mxu0 %v2201_v45  ;;  %1198 = vmatprep.subr.bf16.mxu1 %v2204_v46 }
 0x16e   :  { %1117 = vmatpush1.bf16.msra.mxu0 %v2199_v16  ;;  %1199 = vmatpush1.bf16.msra.mxu1 %v2202_v48 }
 0x16f   :  { %1928 = vmatprep.subr.bf16.mxu0 %v2205_v49  ;;  %1950 = vmatprep.subr.bf16.mxu1 %v2206_v50  ;;  %v1892_v50 = vld [vmem:[%s2641_s6] ss:$0 sm:$0xff]  ;;  %s2387_s6 = smov [#allocation10]  }
 0x170   :  { %s1743_s13 = sshll.u32 %s2387_s6, 4  ;;  %s1744_s13 = int_to_ptr.vmem [resolvable:$true] %s1743_s13 }
 0x171   :  { %1119 = vmatmul.mubr.bf16.vlgmr.msra.gmra.mrb[4].mxu0 %v253_v53  ;;  %1201 = vmatmul.mubr.bf16.vlgmr.msra.gmra.mrb[4].mxu1 %v253_v53  ;;  %s2341_s14 = scalar_lea.vmem %s1744_s13, 384  ;;  %p2346_p5 = scmp.lt.s32.totalorder %s1744_s13, %s1744_s13 }
 0x172   :  { %1929 = vmatpush3.bf16.msra.mxu0 %v2207_v29  ;;  %1951 = vmatpush3.bf16.msra.mxu1 %v2208_v52  ;;  %p2342_p4 = scmp.ne.s32.totalorder %s1744_s13, %s2341_s14  ;;  %p2347_p6 = scmp.lt.s32.totalorder %s2341_s14, %s2341_s14 }
 0x173   :  { %1930 = vmatprep.subr.bf16.mxu0 %v2209_v54  ;;  %1952 = vmatprep.subr.bf16.mxu1 %v2210_v55 }
 0x174   :  { %p2348_p7 = por %p2347_p6, %p2346_p5 }
 0x176   :  { %1931 = vmatpush3.bf16.msra.mxu0 %v2211_v56  ;;  %1953 = vmatpush3.bf16.msra.mxu1 %v2212_v57  ;;  %p2349_p8 = pnand %p2348_p7, %p2342_p4 }
 0x177   :  { %1932 = vmatprep.subr.bf16.mxu0 %v2213_v58  ;;  %1954 = vmatprep.subr.bf16.mxu1 %v2214_v59 }
 0x17a   :  { %1933 = vmatpush3.bf16.msra.mxu0 %v2215_v60  ;;  %1955 = vmatpush3.bf16.msra.mxu1 %v2216_v61 }
 0x17b   :  { %1934 = vmatprep.subr.bf16.mxu0 %v2217_v62  ;;  %1956 = vmatprep.subr.bf16.mxu1 %v2218_v63 }
 0x17e   :  { %1935 = vmatpush3.bf16.msra.mxu0 %v2219_v0  ;;  %1957 = vmatpush3.bf16.msra.mxu1 %v2220_v1 }
 0x17f   :  { %1936 = vmatprep.subr.bf16.mxu0 %v2221_v2  ;;  %1958 = vmatprep.subr.bf16.mxu1 %v2222_v3 }
 0x182   :  { %1937 = vmatpush3.bf16.msra.mxu0 %v2223_v4  ;;  %1959 = vmatpush3.bf16.msra.mxu1 %v2224_v5 }
 0x183   :  { %1938 = vmatprep.subr.bf16.mxu0 %v2225_v6  ;;  %1960 = vmatprep.subr.bf16.mxu1 %v2226_v7 }
 0x186   :  { %1939 = vmatpush3.bf16.msra.mxu0 %v2227_v8  ;;  %1961 = vmatpush3.bf16.msra.mxu1 %v2228_v9 }
 0x187   :  { %1940 = vmatprep.subr.bf16.mxu0 %v2229_v10  ;;  %1962 = vmatprep.subr.bf16.mxu1 %v2230_v11 }
 0x18a   :  { %1941 = vmatpush3.bf16.msra.mxu0 %v2231_v12  ;;  %1963 = vmatpush3.bf16.msra.mxu1 %v2232_v13 }
 0x18b   :  { %1942 = vmatprep.subr.bf16.mxu0 %v2233_v18  ;;  %1964 = vmatprep.subr.bf16.mxu1 %v2234_v20 }
 0x18e   :  { %1943 = vmatpush3.bf16.msra.mxu0 %v2235_v21  ;;  %1965 = vmatpush3.bf16.msra.mxu1 %v2236_v22 }
 0x244   :  { %v1120_v28 = vpop.f32.mrb[4].mxu0  ;;  %v1202_v30 = vpop.f32.mrb[4].mxu1 }
 0x245   :  { %v1972_v31 = vadd.f32 %v1120_v28, %v388_v24  ;;  %v1974_v33 = vadd.f32 %v1202_v30, %v396_v25  ;;  %v1122_v34 = vpop.f32.mrb[5].mxu0  ;;  %v1204_v35 = vpop.f32.mrb[5].mxu1 }
 0x246   :  { %v1973_v36 = vadd.f32 %v1122_v34, %v392_v26  ;;  %v1975_v37 = vadd.f32 %v1204_v35, %v400_v27  ;;  %v1124_v38 = vpop.f32.mrb[6].mxu0  ;;  %v1206_v39 = vpop.f32.mrb[6].mxu1 }
 0x247   :  { %vm1209_vm5 = vcmp.ge.f32.partialorder %v1972_v31, 0.0  ;;  %v1213_v15 = vmul.f32 0.2, %v1972_v31  ;;  %vm1211_vm6 = vcmp.ge.f32.partialorder %v1974_v33, 0.0  ;;  %v1215_v32 = vmul.f32 0.2, %v1974_v33 }
 0x248   :  { %vm1210_vm7 = vcmp.ge.f32.partialorder %v1973_v36, 0.0  ;;  %v1214_v40 = vmul.f32 0.2, %v1973_v36  ;;  %vm1212_vm8 = vcmp.ge.f32.partialorder %v1975_v37, 0.0  ;;  %v1216_v17 = vmul.f32 0.2, %v1975_v37 }
 0x249   :  { %v1217_v14 = vsel %vm1209_vm5, %v1972_v31, %v1213_v15  ;;  %v1219_v19 = vsel %vm1211_vm6, %v1974_v33, %v1215_v32  ;;  %v1125_v41 = vpop.f32.mrb[7].mxu0  ;;  %v1207_v42 = vpop.f32.mrb[7].mxu1 }
 0x24a   :  { %v1218_v43 = vsel %vm1210_vm7, %v1973_v36, %v1214_v40  ;;  %v1220_v44 = vsel %vm1212_vm8, %v1975_v37, %v1216_v17  ;;  %v1221_v47 = vpack.c.bf16 %v1217_v14, %v1217_v14  ;;  %v1223_v16 = vpack.c.bf16 %v1219_v19, %v1219_v19 }
 0x24b   :  { %v1222_v45 = vpack.c.bf16 %v1218_v43, %v1218_v43  ;;  %v1224_v46 = vpack.c.bf16 %v1220_v44, %v1220_v44 }
 0x24d   :  { %1520 = vmatprep.mubr.bf16.mxu0 %v1222_v45  ;;  %1560 = vmatprep.mubr.bf16.mxu1 %v1224_v46 }
 0x24e   :  { %1521 = vmatmul.mubr.bf16.vlgmr.msra.gmra.mrb[8].mxu0 %v1221_v47  ;;  %1561 = vmatmul.mubr.bf16.vlgmr.msra.gmra.mrb[8].mxu1 %v1223_v16 }
 0x321   :  { %v1944_v48 = vpop.f32.mrb[8].mxu0  ;;  %v1966_v49 = vpop.f32.mrb[8].mxu1 }
 0x322   :  { %v1945_v51 = vpop.f32.mrb[9].mxu0  ;;  %v1967_v29 = vpop.f32.mrb[9].mxu1 }
 0x323   :  { %v1946_v52 = vadd.f32 %v1945_v51, %v1944_v48  ;;  %v1968_v53 = vadd.f32 %v1967_v29, %v1966_v49  ;;  %v1947_v54 = vpop.f32.mrb[10].mxu0  ;;  %v1969_v55 = vpop.f32.mrb[10].mxu1 }
 0x324   :  { %v1948_v56 = vpop.f32.mrb[11].mxu0  ;;  %v1970_v57 = vpop.f32.mrb[11].mxu1 }
 0x325   :  { %v1523_v58 = vadd.f32 %v1946_v52, %v1892_v50 }
 0x327   :  { %v1563_v59 = vadd.f32 %v1968_v53, %v1523_v58 }
 0x329   :  { %1572 = vrot.lane.b32.xlu1 %v1563_v59, %s2380_s29  ;;  %1568 = vrot.lane.b32.xlu0 %v1563_v59, %s2381_s30  ;;  %v1578_v62 = vmul.f32 %v1563_v59, %v1563_v59 }
 0x32d   :  { %1574 = vrot.lane.b32.xlu1 %v1563_v59, %s2382_s8  ;;  %1570 = vrot.lane.b32.xlu0 %v1563_v59, %s2383_s9 }
 0x331   :  { %1576 = vrot.lane.b32.xlu0 %v1563_v59, %s2384_s10 }
 0x39b   :  { %v1569_v60 = vpop.permute.xlu0 %1568  ;;  %v1573_v4 = vpop.permute.xlu1 %1572 }
 0x39c   :  { %v1579_v61 = vmul.f32 %v1569_v60, %v1569_v60 }
 0x39e   :  { %v1580_v0 = vadd.f32 %v1579_v61, %v1578_v62 }
 0x39f   :  { %v1571_v63 = vpop.permute.xlu0 %1570  ;;  %v1575_v9 = vpop.permute.xlu1 %1574 }
 0x3a0   :  { %v1581_v1 = vmul.f32 %v1571_v63, %v1571_v63 }
 0x3a2   :  { %v1582_v2 = vadd.f32 %v1581_v1, %v1580_v0 }
 0x3a3   :  { %v1577_v12 = vpop.permute.xlu0 %1576 }
 0x3a4   :  { %v1583_v3 = vmax.f32 %v1582_v2, 1e-24 }
 0x3a6   :  { %2237 = vrsqrt.f32 %v1583_v3 }
 0x3b0   :  { %v2238_v5 = vpop.eup %2237 }
 0x3b1   :  { %v1585_v6 = vmul.f32 %v2238_v5, %v1563_v59  ;;  %v2522_v7 = vmul.f32 %v2238_v5, %v1571_v63  ;;  %v2524_v8 = vmul.f32 %v2238_v5, %v1569_v60 }
 0x3b3   :  { %v1588_v10 = vmul.f32 %v1585_v6, %v1573_v4  ;;  %v1589_v11 = vmul.f32 %v2524_v8, %v1575_v9  ;;  %v1591_v18 = vmul.f32 %v2522_v7, %v1577_v12 }
 0x3b5   :  { %v1590_v13 = vadd.f32 %v1589_v11, %v1588_v10 }
 0x3b7   :  { %v1592_v20 = vadd.f32 %v1591_v18, %v1590_v13 }
 0x3b9   :  { %v1593_v21 = vmul.f32 %v1592_v20, %v1585_v6  ;;  %v1595_v22 = vmul.f32 %v1592_v20, %v2524_v8  ;;  %v1597_v23 = vmul.f32 %v1592_v20, %v2522_v7 }
 0x3bb   :  { %v1594_v24 = vsub.f32 %v1573_v4, %v1593_v21  ;;  %v1596_v25 = vsub.f32 %v1575_v9, %v1595_v22  ;;  %v1598_v26 = vsub.f32 %v1577_v12, %v1597_v23 }
 0x3bd   :  { %v1599_v27 = vmul.f32 %v1594_v24, %v1594_v24  ;;  %v1600_v28 = vmul.f32 %v1596_v25, %v1596_v25  ;;  %v1602_v31 = vmul.f32 %v1598_v26, %v1598_v26 }
 0x3bf   :  { %v1601_v30 = vadd.f32 %v1600_v28, %v1599_v27 }
 0x3c1   :  { %v1603_v33 = vadd.f32 %v1602_v31, %v1601_v30 }
 0x3c3   :  { %v1604_v34 = vmax.f32 %v1603_v33, 1e-24 }
 0x3c5   :  { %2239 = vrsqrt.f32 %v1604_v34 }
 0x3cf   :  { %v2240_v35 = vpop.eup %2239 }
 0x3d0   :  { %v1606_v36 = vmul.f32 %v2240_v35, %v1594_v24  ;;  %v1607_v37 = vmul.f32 %v2240_v35, %v1596_v25  ;;  %v1608_v15 = vmul.f32 %v2240_v35, %v1598_v26 }
 0x3d2   :  { %v1615_v38 = vmul.f32 %v1607_v37, %v1585_v6  ;;  %v1616_v39 = vmul.f32 %v1606_v36, %v2524_v8  ;;  %v1633_v32 = vadd.f32 %v1607_v37, %v1585_v6  ;;  %v1634_v17 = vsub.f32 %v1585_v6, %v1607_v37 }
 0x3d3   :  { %vm1619_vm9 = vcmp.gt.f32.partialorder %v1585_v6, %v1607_v37  ;;  %v1620_v14 = vsub.f32 0.0, %v1607_v37  ;;  %v1609_v42 = vmul.f32 %v1608_v15, %v2524_v8  ;;  %v1610_v45 = vmul.f32 %v1607_v37, %v2522_v7 }
 0x3d4   :  { %v1617_v40 = vsub.f32 %v1615_v38, %v1616_v39  ;;  %v1637_v19 = vsub.f32 1.0, %v1634_v17  ;;  %v1639_v41 = vsub.f32 1.0, %v1633_v32  ;;  %v1635_v43 = vadd.f32 1.0, %v1634_v17  ;;  %vm1623_vm12 = vmxor %vm1619_vm9, %vm2385_vm11 }
 0x3d5   :  { %v1641_v44 = vadd.f32 1.0, %v1633_v32  ;;  %v1612_v46 = vmul.f32 %v1606_v36, %v2522_v7  ;;  %v1613_v47 = vmul.f32 %v1608_v15, %v1585_v6  ;;  %vm1621_vm13 = vcmp.lt.f32.partialorder %v1585_v6, %v1620_v14 }
 0x3d6   :  { %vm1618_vm10 = vcmp.lt.f32.partialorder %v1617_v40, 1e-06  ;;  %v1640_v16 = vadd.f32 %v1639_v41, %v1617_v40  ;;  %v1638_v50 = vsub.f32 %v1637_v19, %v1617_v40  ;;  %v1636_v29 = vsub.f32 %v1635_v43, %v1617_v40 }
 0x3d7   :  { %vm1625_vm14 = vmxor %vm1618_vm10, %vm2385_vm11  ;;  %v1642_v48 = vadd.f32 %v1641_v44, %v1617_v40  ;;  %v1611_v53 = vsub.f32 %v1609_v42, %v1610_v45  ;;  %v1614_v54 = vsub.f32 %v1612_v46, %v1613_v47  ;;  %v1628_v60 = vsub.f32 %v2524_v8, %v1606_v36 }
 0x3d8   :  { %vm2538_vm15 = vmand %vm1625_vm14, %vm1621_vm13  ;;  %v1627_v2 = vadd.f32 %v1606_v36, %v2524_v8 }
 0x3d9   :  { %vm2543_vm0 = vmand %vm1618_vm10, %vm1623_vm12  ;;  %v1643_v52 = vsel %vm2538_vm15, %v1640_v16, %v1642_v48  ;;  %v1630_v58 = vsub.f32 %v1608_v15, %v1614_v54  ;;  %v1631_v59 = vadd.f32 %v1611_v53, %v2522_v7  ;;  %v1629_v61 = vadd.f32 %v1614_v54, %v1608_v15 }
 0x3da   :  { %vm2551_vm1 = vmand %vm1618_vm10, %vm1619_vm9  ;;  %v1644_v56 = vsel %vm2543_vm0, %v1638_v50, %v1643_v52  ;;  %v1632_v62 = vsub.f32 %v1611_v53, %v2522_v7 }
 0x3db   :  { %v1645_v57 = vsel %vm2551_vm1, %v1636_v29, %v1644_v56  ;;  %v1649_v0 = vsel %vm2538_vm15, %v1631_v59, %v1630_v58 }
 0x3dc   :  { %2241 = vrsqrt.f32 %v1645_v57  ;;  %v1646_v63 = vsel %vm2538_vm15, %v1628_v60, %v1645_v57  ;;  %v1655_v1 = vsel %vm2538_vm15, %v1645_v57, %v1628_v60  ;;  %v1652_v3 = vsel %vm2538_vm15, %v1629_v61, %v1632_v62 }
 0x3dd   :  { %v1647_v4 = vsel %vm2543_vm0, %v1632_v62, %v1646_v63  ;;  %v1650_v5 = vsel %vm2543_vm0, %v1627_v2, %v1649_v0  ;;  %v1653_v6 = vsel %vm2543_vm0, %v1645_v57, %v1652_v3  ;;  %v1656_v7 = vsel %vm2543_vm0, %v1629_v61, %v1655_v1 }
 0x3de   :  { %v1648_v8 = vsel %vm2551_vm1, %v1630_v58, %v1647_v4  ;;  %v1651_v11 = vsel %vm2551_vm1, %v1636_v29, %v1650_v5  ;;  %v1654_v12 = vsel %vm2551_vm1, %v1627_v2, %v1653_v6  ;;  %v1657_v13 = vsel %vm2551_vm1, %v1631_v59, %v1656_v7 }
 0x3df   :  { %v2386_v60 = vmov 0.0  }
 0x3e6   :  { %v2242_v9 = vpop.eup %2241 }
 0x3e7   :  { %v1659_v10 = vmul.f32 0.5, %v2242_v9 }
 0x3e9   :  { %v2587_v18 = vmul.f32 %v1659_v10, %v1648_v8  ;;  %v2589_v20 = vmul.f32 %v1659_v10, %v1651_v11  ;;  %v2591_v21 = vmul.f32 %v1659_v10, %v1654_v12  ;;  %v2593_v22 = vmul.f32 %v1659_v10, %v1657_v13 }
 0x3eb   :  { %v1676_v23 = vand.u32 2147483647, %v2587_v18  ;;  %v1664_v24 = vmul.f32 %v2589_v20, %v2589_v20  ;;  %v1665_v25 = vmul.f32 %v2591_v21, %v2591_v21  ;;  %v1667_v28 = vmul.f32 %v2593_v22, %v2593_v22 }
 0x3ec   :  { %vm1716_vm9 = vcmp.ge.f32.partialorder %v2587_v18, 0.0 }
 0x3ed   :  { %v1678_v26 = vmax.f32 %v1676_v23, 1e-30  ;;  %v1666_v27 = vadd.f32 %v1665_v25, %v1664_v24  ;;  %vm1677_vm10 = vcmp.eq.f32.partialorder %v1676_v23, 0.0 }
 0x3ef   :  { %2243 = vrcp.f32 %v1678_v26  ;;  %v2604_v30 = vadd.f32 %v1667_v28, %v1666_v27 }
 0x3f1   :  { %2245 = vrsqrt.f32 %v2604_v30  ;;  %vm1671_vm2 = vcmp.eq.f32.partialorder %v2604_v30, inf  ;;  %v1674_v37 = vand.u32 2147483648, %v2604_v30  ;;  %vm1673_vm3 = vcmp.eq.f32.partialorder %v2604_v30, 0.0 }
 0x3f9   :  { %v2244_v31 = vpop.eup %2243 }
 0x3fa   :  { %v1680_v33 = vmul.f32 %v2244_v31, %v1678_v26 }
 0x3fb   :  { %v2246_v34 = vpop.eup %2245 }
 0x3fc   :  { %v1681_v35 = vsub.f32 2.0, %v1680_v33  ;;  %v1670_v36 = vmul.f32 %v2246_v34, %v2604_v30 }
 0x3fe   :  { %v1672_v38 = vsel %vm1671_vm2, %v2604_v30, %v1670_v36  ;;  %v1682_v39 = vmul.f32 %v2244_v31, %v1681_v35 }
 0x3ff   :  { %v1675_v15 = vsel %vm1673_vm3, %v1674_v37, %v1672_v38 }
 0x400   :  { %v1683_v32 = vmul.f32 %v1682_v39, %v1675_v15  ;;  %v1724_v29 = vmax.f32 %v1675_v15, 1e-30  ;;  %vm1719_vm8 = vcmp.gt.f32.partialorder %v1675_v15, 0.0 }
 0x401   :  { %v1720_v6 = vsel %vm1719_vm8, 1.5707964, %v2386_v60 }
 0x402   :  { %v1688_v40 = vmax.f32 %v1683_v32, 1e-30  ;;  %v1693_v17 = vadd.f32 1.0, %v1683_v32  ;;  %vm1684_vm4 = vcmp.gt.f32.partialorder %v1683_v32, 2.4142137  ;;  %v1925_v47 = vadd.f32 -1.0, %v1683_v32 }
 0x403   :  { %vm1685_vm5 = vmxor %vm1684_vm4, %vm2385_vm11  ;;  %vm1686_vm6 = vcmp.gt.f32.partialorder %v1683_v32, 0.41421357  ;;  %vm1723_vm11 = vcmp.gt.f32.partialorder %v2604_v30, 0.0 }
 0x404   :  { %2247 = vrcp.f32 %v1688_v40  ;;  %vm1687_vm7 = vmand %vm1685_vm5, %vm1686_vm6 }
 0x405   :  { %2249 = vrcp.f32 %v1693_v17  ;;  %v1703_v61 = vsel %vm1687_vm7, 0.7853982, %v2386_v60 }
 0x406   :  { %2251 = vrcp.f32 %v1724_v29  ;;  %v1704_v1 = vsel %vm1684_vm4, 1.5707964, %v1703_v61 }
 0x40e   :  { %v2248_v14 = vpop.eup %2247 }
 0x40f   :  { %v2250_v19 = vpop.eup %2249  ;;  %v1690_v41 = vmul.f32 %v2248_v14, %v1688_v40 }
 0x410   :  { %v1695_v42 = vmul.f32 %v2250_v19, %v1693_v17  ;;  %v2252_v59 = vpop.eup %2251 }
 0x411   :  { %v1691_v43 = vsub.f32 2.0, %v1690_v41  ;;  %v1726_v0 = vmul.f32 %v2252_v59, %v1724_v29 }
 0x412   :  { %v1696_v44 = vsub.f32 2.0, %v1695_v42 }
 0x413   :  { %v1692_v45 = vmul.f32 %v2248_v14, %v1691_v43  ;;  %v1727_v4 = vsub.f32 2.0, %v1726_v0 }
 0x414   :  { %v1697_v46 = vmul.f32 %v2250_v19, %v1696_v44 }
 0x415   :  { %v1698_v16 = vsub.f32 0.0, %v1692_v45  ;;  %v1728_v10 = vmul.f32 %v2252_v59, %v1727_v4 }
 0x416   :  { %v1700_v48 = vmul.f32 %v1925_v47, %v1697_v46 }
 0x418   :  { %v1701_v49 = vsel %vm1687_vm7, %v1700_v48, %v1683_v32 }
 0x419   :  { %v1702_v50 = vsel %vm1684_vm4, %v1698_v16, %v1701_v49 }
 0x41a   :  { %v1705_v51 = vmul.f32 %v1702_v50, %v1702_v50 }
 0x41c   :  { %v1706_v52 = vmul.f32 0.080537446, %v1705_v51 }
 0x41e   :  { %v1926_v53 = vadd.f32 -0.13877685, %v1706_v52 }
 0x420   :  { %v1708_v54 = vmul.f32 %v1926_v53, %v1705_v51 }
 0x422   :  { %v1709_v55 = vadd.f32 0.19977711, %v1708_v54 }
 0x424   :  { %v1710_v56 = vmul.f32 %v1709_v55, %v1705_v51 }
 0x426   :  { %v1927_v57 = vadd.f32 -0.3333295, %v1710_v56 }
 0x428   :  { %v1712_v58 = vmul.f32 %v1927_v57, %v1705_v51 }
 0x42a   :  { %v1713_v62 = vmul.f32 %v1712_v58, %v1702_v50 }
 0x42c   :  { %v1714_v63 = vadd.f32 %v1713_v62, %v1702_v50 }
 0x42e   :  { %v1715_v2 = vadd.f32 %v1714_v63, %v1704_v1 }
 0x430   :  { %v1717_v3 = vsub.f32 0.0, %v1715_v2 }
 0x432   :  { %v1718_v5 = vsel %vm1716_vm9, %v1715_v2, %v1717_v3 }
 0x433   :  { %v1721_v7 = vsel %vm1677_vm10, %v1720_v6, %v1718_v5 }
 0x434   :  { %v1722_v9 = vmul.f32 2.0, %v1721_v7 }
 0x436   :  { %v1729_v8 = vmul.f32 %v1728_v10, %v1722_v9 }
 0x438   :  { %v1730_v11 = vsel %vm1723_vm11, %v1729_v8, 2.0 }
 0x439   :  { %v1731_v12 = vmul.f32 %v1730_v11, %v2589_v20  ;;  %v1733_v13 = vmul.f32 %v1730_v11, %v2591_v21  ;;  %v1735_v24 = vmul.f32 %v1730_v11, %v2593_v22 }
 0x43b   :  { %1732 = vst [vmem:[#allocation10] sm:$0xff] %v1731_v12  ;;  %1734 = vst [vmem:[#allocation10 + $0x8] sm:$0xff] %v1733_v13 }
 0x43c   :  { %1736 = vst [vmem:[#allocation10 + $0x10] sm:$0xff] %v1735_v24 }
 0x43d   :  { %2352 = shalt.err (!%p2349_p8)
}
 0x43e   :  { %s2353_s16 = scalar_lea.hbm %s2642_s7, 384 }
 0x43f   :  { %p2354_p9 = scmp.ne.s32.totalorder %s2642_s7, %s2353_s16  ;;  %p2357_p10 = scmp.lt.u32.totalorder %s2353_s16, %s2642_s7 }
 0x441   :  { %p2359_p11 = pnand %p2357_p10, %p2354_p9 }
 0x443   :  { %2362 = shalt.err (!%p2359_p11)
}
 0x444   :  { %1746 = dma.vmem_to_hbm [thread:$0]  %s1744_s13, 384, %s2642_s7, [#allocation4]  }
 0x445   :  { %2369 = dma.done.wait [#allocation4], 384  }
 0x446   :  { %2370 = vsyncadd [#allocation4], 4294966912 }
 0x447   :  { %1750 = vsyncpa [#allocation3], 1 }
 0x448   :  { %1751 = vsyncpa [#allocation6], 1 }
 0x449   :  { %1752 = vsyncpa [#allocation9], 1 }
 0x44a   :  { %1753 = vsyncpa [#allocation4], 1 }

</bundles_post_ra>
